<compile_context>
chip_gen: v7x
topology: tpu7x:2x2x1
jax: 0.10.0
libtpu: 0.0.40
codegen_flags: <defaults>
</compile_context>

<pallas_src>
import jax
import jax.numpy as jnp
from jax.experimental import pallas as pl
from jax.experimental.pallas import tpu as pltpu


# ---------------- Fused forward kernel ----------------
def _build_fused_kernel(n_layers, e_pad):
    def kernel(src_ids_ref,                              # SMEM (n_src,) int32  [scalar prefetch]
               feat_ref, w_feat_ref, b_feat_ref,         # VMEM projector inputs
               id_emb_hbm,                               # HBM (pl.ANY) embedding table
               adjn_ref, wq_ref, bq_ref, wcat_ref, bw_ref,  # stacked per-layer params
               uv_ref, pn_bias_ref,                      # fused edge indices / edge biases
               out_ref,                                  # (e_pad, 1) f32
               emb_buf, emb_sem):                        # scratch: gather buffer + DMA semaphore
        n_src, dp = emb_buf.shape

        # ---- LinearProjector: real id-embedding row gather via per-row async DMA ----
        copies = []
        for i in range(n_src):
            row = src_ids_ref[i]
            cp = pltpu.make_async_copy(id_emb_hbm.at[pl.ds(row, 1), :],
                                       emb_buf.at[pl.ds(i, 1), :],
                                       emb_sem)
            cp.start()
            copies.append(cp)
        # overlap the dense feature Linear with the gather DMAs
        feat_proj = jnp.dot(feat_ref[...], w_feat_ref[...],
                            preferred_element_type=jnp.float32)
        for cp in copies:
            cp.wait()
        h_item = emb_buf[...] + feat_proj + b_feat_ref[...]

        # ---- SAGENet: stacked WeightedSAGEConv layers (eval mode: dropout = identity) ----
        # h is carried at a fixed n_src rows; rows beyond each layer's n_dst are dead because
        # their adjacency rows/columns are zero-padded in glue, so they never reach the output.
        # TODO(synk): training-mode Dropout(0.5) is intentionally run as identity.
        h = h_item
        for l in range(n_layers):
            h_bf = h.astype(jnp.bfloat16)                         # cast once per layer
            n_act = jnp.maximum(
                jnp.dot(h_bf, wq_ref[l], preferred_element_type=jnp.float32)
                + bq_ref[l], 0.0)
            # adjn = adj / clamp(rowsum(adj), 1): row-normalized in f32 in glue
            agg = jnp.dot(adjn_ref[l], n_act.astype(jnp.bfloat16),
                          preferred_element_type=jnp.float32)
            # single K=2*dp MXU push: [agg | h_dst] @ [w1; w2]  (concat is 128-lane aligned
            # because the feature dim is padded to the lane width in glue)
            x_cat = jnp.concatenate([agg, h], axis=-1).astype(jnp.bfloat16)
            z = jnp.maximum(
                jnp.dot(x_cat, wcat_ref[l], preferred_element_type=jnp.float32)
                + bw_ref[l], 0.0)
            # z / ||z|| with the reference's exact where(norm == 0, 1, norm) guard
            norm = jnp.sqrt(jnp.sum(z * z, axis=1, keepdims=True))
            h = z / jnp.where(norm == 0.0, 1.0, norm)

        # h_item_dst is a prefix of h_item (shared projector weights; DGL MFG prefix convention
        # asserted in glue).  Rows >= n_dst_last are never selected by the scorer indices.
        h_final = (h_item + h).astype(jnp.bfloat16)

        # ---- ItemToItemScorer + margin: one fused one-hot MXU gather for [pu; pv; nu; nv] ----
        cols = jax.lax.broadcasted_iota(jnp.int32, (4 * e_pad, n_src), 1)
        onehot = (cols == uv_ref[...]).astype(jnp.bfloat16)       # exact 0/1 in bf16
        g = jnp.dot(onehot, h_final, preferred_element_type=jnp.float32)   # (4*e_pad, dp)
        h_pu, h_pv = g[0 * e_pad:1 * e_pad], g[1 * e_pad:2 * e_pad]
        h_nu, h_nv = g[2 * e_pad:3 * e_pad], g[3 * e_pad:4 * e_pad]
        pn_bias = pn_bias_ref[...]
        pos = jnp.sum(h_pu * h_pv, axis=1, keepdims=True) + pn_bias[:e_pad]
        neg = jnp.sum(h_nu * h_nv, axis=1, keepdims=True) + pn_bias[e_pad:]
        # (e_pad, 1) store: no 128x lane broadcast of the loss.
        # TODO(synk): at production E reshape the loss to (E/128, 128) for lane-dense stores.
        out_ref[...] = jnp.maximum(neg - pos + 1.0, 0.0)

    return kernel


# ---------------- Glue ----------------
def _pad2d(x, rows, cols):
    return jnp.zeros((rows, cols), x.dtype).at[:x.shape[0], :x.shape[1]].set(x)


def pinsage_forward(params, blocks, batch_nids, pos_edges, neg_edges):
    n_layers = len(blocks)
    d = params["id_emb"].shape[1]
    dp = ((d + 127) // 128) * 128                 # pad feature dim to the 128-lane width
    n_src = blocks[0]["id"].shape[0]

    src_ids = blocks[0]["id"].astype(jnp.int32)
    feat_bf = blocks[0]["feat"].astype(jnp.bfloat16)
    w_feat = _pad2d(params["w_feat"], params["w_feat"].shape[0], dp).astype(jnp.bfloat16)
    b_feat = _pad2d(params["b_feat"].reshape(1, -1), 1, dp).astype(jnp.float32)
    id_emb = _pad2d(params["id_emb"], params["id_emb"].shape[0], dp).astype(jnp.float32)

    # stacked per-layer params; adjacency zero-padded to (n_src, n_src) and row-normalized (f32)
    adjn_l, wq_l, bq_l, wcat_l, bw_l = [], [], [], [], []
    for (wq, bq, w1, w2, bw), block in zip(params["sage"], blocks):
        adj = block["adj"].astype(jnp.float32)
        adjn = adj / jnp.maximum(jnp.sum(adj, axis=1, keepdims=True), 1.0)
        adjn_l.append(_pad2d(adjn, n_src, n_src))
        wq_l.append(_pad2d(wq, dp, dp))
        bq_l.append(_pad2d(bq.reshape(1, -1), 1, dp))
        wcat_l.append(jnp.concatenate([_pad2d(w1, dp, dp), _pad2d(w2, dp, dp)], axis=0))
        bw_l.append(_pad2d(bw.reshape(1, -1), 1, dp))
    adjn_all = jnp.stack(adjn_l).astype(jnp.bfloat16)
    wq_all = jnp.stack(wq_l).astype(jnp.bfloat16)
    bq_all = jnp.stack(bq_l).astype(jnp.float32)
    wcat_all = jnp.stack(wcat_l).astype(jnp.bfloat16)
    bw_all = jnp.stack(bw_l).astype(jnp.float32)

    # pos/neg edges: pad E to a sublane multiple and fuse all four index vectors into one column
    pu, pv = pos_edges
    nu, nv = neg_edges
    e = pu.shape[0]
    e_pad = pl.cdiv(e, 8) * 8
    pad_i = lambda x: jnp.concatenate([x.astype(jnp.int32),
                                       jnp.zeros((e_pad - e,), jnp.int32)])
    uv_all = jnp.concatenate([pad_i(pu), pad_i(pv), pad_i(nu), pad_i(nv)]).reshape(4 * e_pad, 1)

    bias_b = params["bias"][batch_nids]           # tiny (n_dst_last,) glue gather
    pad_f = lambda x: jnp.concatenate([x.astype(jnp.float32),
                                       jnp.zeros((e_pad - e,), jnp.float32)])
    pn_bias = jnp.concatenate([pad_f(bias_b[pu] + bias_b[pv]),
                               pad_f(bias_b[nu] + bias_b[nv])]).reshape(2 * e_pad, 1)

    inputs = (feat_bf, w_feat, b_feat, id_emb, adjn_all, wq_all, bq_all,
              wcat_all, bw_all, uv_all, pn_bias)

    # rough cost hint for the XLA scheduler
    flops = (2 * n_src * feat_bf.shape[1] * dp
             + n_layers * (2 * n_src * dp * dp + 2 * n_src * n_src * dp
                           + 2 * n_src * 2 * dp * dp)
             + 2 * 4 * e_pad * n_src * dp)
    bytes_accessed = (sum(int(x.size) * x.dtype.itemsize for x in inputs)
                      + int(src_ids.size) * 4 + e_pad * 4)

    grid_spec = pltpu.PrefetchScalarGridSpec(
        num_scalar_prefetch=1,                    # src node ids -> SMEM, drive the DMA gather
        grid=(1,),                                # TODO(synk): tile dst rows "parallel" for v7x
        in_specs=[
            pl.BlockSpec(feat_bf.shape, lambda i, ids: (0, 0)),
            pl.BlockSpec(w_feat.shape, lambda i, ids: (0, 0)),
            pl.BlockSpec(b_feat.shape, lambda i, ids: (0, 0)),
            pl.BlockSpec(memory_space=pl.ANY),    # embedding table stays in HBM; rows DMA'd
            pl.BlockSpec(adjn_all.shape, lambda i, ids: (0, 0, 0)),
            pl.BlockSpec(wq_all.shape, lambda i, ids: (0, 0, 0)),
            pl.BlockSpec(bq_all.shape, lambda i, ids: (0, 0, 0)),
            pl.BlockSpec(wcat_all.shape, lambda i, ids: (0, 0, 0)),
            pl.BlockSpec(bw_all.shape, lambda i, ids: (0, 0, 0)),
            pl.BlockSpec(uv_all.shape, lambda i, ids: (0, 0)),
            pl.BlockSpec(pn_bias.shape, lambda i, ids: (0, 0)),
        ],
        out_specs=pl.BlockSpec((e_pad, 1), lambda i, ids: (0, 0)),
        scratch_shapes=[pltpu.VMEM((n_src, dp), jnp.float32),   # gathered id-embedding rows
                        pltpu.SemaphoreType.DMA],
    )

    out = pl.pallas_call(
        _build_fused_kernel(n_layers, e_pad),
        grid_spec=grid_spec,
        out_shape=jax.ShapeDtypeStruct((e_pad, 1), jnp.float32),
        compiler_params=pltpu.CompilerParams(
            dimension_semantics=("arbitrary",),
            vmem_limit_bytes=32 * 1024 * 1024),
        cost_estimate=pl.CostEstimate(flops=int(flops),
                                      transcendentals=int(2 * n_layers * n_src),
                                      bytes_accessed=int(bytes_accessed)),
    )(src_ids, *inputs)
    return out[:e, 0]


# ---------------- Pure-JAX reference (original f32 semantics) ----------------
def pinsage_reference(params, blocks, batch_nids, pos_edges, neg_edges):
    src0 = blocks[0]
    n_dst_last = blocks[-1]["adj"].shape[0]
    h_item = params["id_emb"][src0["id"]] + src0["feat"] @ params["w_feat"] + params["b_feat"]
    h = h_item
    for (wq, bq, w1, w2, bw), block in zip(params["sage"], blocks):
        adj = block["adj"]
        n_dst = adj.shape[0]
        h_dst = h[:n_dst]
        n = jax.nn.relu(h @ wq + bq)
        agg = adj @ n
        ws = jnp.maximum(adj.sum(axis=1, keepdims=True), 1.0)
        z = jax.nn.relu((agg / ws) @ w1 + h_dst @ w2 + bw)
        zn = jnp.sqrt(jnp.sum(z * z, axis=1, keepdims=True))
        zn = jnp.where(zn == 0.0, 1.0, zn)
        h = z / zn
    h_final = h_item[:n_dst_last] + h
    bias = params["bias"]
    pu, pv = pos_edges
    nu, nv = neg_edges
    pos = jnp.sum(h_final[pu] * h_final[pv], 1) + bias[batch_nids[pu]] + bias[batch_nids[pv]]
    neg = jnp.sum(h_final[nu] * h_final[nv], 1) + bias[batch_nids[nu]] + bias[batch_nids[nv]]
    return jnp.maximum(neg - pos + 1.0, 0.0)


# ---------------- Parameter / synthetic-graph construction ----------------
def init_params(key, n_nodes, f_in, d, n_layers):
    ks = jax.random.split(key, 4 + 5 * n_layers)
    params = {
        "id_emb": 0.1 * jax.random.normal(ks[0], (n_nodes, d), jnp.float32),
        "w_feat": 0.1 * jax.random.normal(ks[1], (f_in, d), jnp.float32),
        "b_feat": 0.01 * jax.random.normal(ks[2], (d,), jnp.float32),
        "bias": jnp.zeros((n_nodes,), jnp.float32),   # ItemToItemScorer bias init = zeros
        "sage": [],
    }
    # TODO(synk): textset (bag-of-words) features of LinearProjector are omitted.
    for l in range(n_layers):
        kq, kbq, k1, k2, kbw = ks[4 + 5 * l: 4 + 5 * (l + 1)]
        params["sage"].append((
            0.1 * jax.random.normal(kq, (d, d), jnp.float32),    # Q weight
            0.01 * jax.random.normal(kbq, (d,), jnp.float32),    # Q bias
            0.1 * jax.random.normal(k1, (d, d), jnp.float32),    # W[:hidden]  (agg part)
            0.1 * jax.random.normal(k2, (d, d), jnp.float32),    # W[hidden:]  (h_dst part)
            0.01 * jax.random.normal(kbw, (d,), jnp.float32),    # W bias
        ))
    return params


def make_adj(key, n_dst, n_src, deg):
    ks, kw = jax.random.split(key)
    nbrs = jax.random.randint(ks, (n_dst, deg), 0, n_src)
    w = jax.random.uniform(kw, (n_dst, deg), minval=0.5, maxval=2.0)
    adj = jnp.zeros((n_dst, n_src), jnp.float32)
    rows = jnp.repeat(jnp.arange(n_dst), deg)
    return adj.at[rows, nbrs.reshape(-1)].add(w.reshape(-1))


if __name__ == "__main__":
    D = 32          # hidden_dims
    F_IN = 8        # raw float feature dim
    N_NODES = 32    # items in the full graph (embedding / scorer-bias tables)
    N_SRC0, N_DST0, N_DST1 = 16, 8, 4
    E = 6           # edges in pos / neg pair graphs
    N_LAYERS = 2

    key = jax.random.PRNGKey(0)
    kp, kid, kfeat, ka0, ka1, kpu, kpv, knv = jax.random.split(key, 8)

    params = init_params(kp, N_NODES, F_IN, D, N_LAYERS)

    # message-flow blocks (dst nodes are a prefix of src nodes, DGL MFG convention)
    src0_id = jax.random.randint(kid, (N_SRC0,), 0, N_NODES, dtype=jnp.int32)
    src0_feat = jax.random.normal(kfeat, (N_SRC0, F_IN), jnp.float32)
    blocks = [
        {"id": src0_id, "feat": src0_feat, "adj": make_adj(ka0, N_DST0, N_SRC0, 4)},
        {"id": src0_id[:N_DST0], "feat": src0_feat[:N_DST0],
         "adj": make_adj(ka1, N_DST1, N_DST0, 3)},
    ]

    # the shared-weight h_item_dst == h_item[:n_dst_last] shortcut needs the prefix property
    assert bool(jnp.all(blocks[-1]["id"][:N_DST1] == blocks[0]["id"][:N_DST1]))
    assert bool(jnp.all(blocks[-1]["feat"][:N_DST1] == blocks[0]["feat"][:N_DST1]))

    # pos / neg pair graphs over the final batch items
    batch_nids = src0_id[:N_DST1]
    pos_u = jax.random.randint(kpu, (E,), 0, N_DST1, dtype=jnp.int32)
    pos_v = jax.random.randint(kpv, (E,), 0, N_DST1, dtype=jnp.int32)
    neg_u = pos_u
    neg_v = jax.random.randint(knv, (E,), 0, N_DST1, dtype=jnp.int32)

    fwd = jax.jit(pinsage_forward)
    out = jax.block_until_ready(
        fwd(params, blocks, batch_nids, (pos_u, pos_v), (neg_u, neg_v)))

    ref = pinsage_reference(params, blocks, batch_nids, (pos_u, pos_v), (neg_u, neg_v))

    assert out.shape == (E,) and out.dtype == jnp.float32
    assert bool(jnp.all(jnp.isfinite(out)))
    max_diff = float(jnp.max(jnp.abs(out - ref)))
    # gathers and the z/||z|| guard are exact; remaining deviation is bf16 MXU rounding only
    assert max_diff < 0.5, f"kernel deviates from f32 reference by {max_diff}"
    print("KERNEL_OK")
</pallas_src>

<mosaic_0001>
module attributes {stable_mosaic.version = 11 : i64} {
  func.func @kernel(%arg0: i32, %arg1: memref<16xi32, #tpu.memory_space<smem>>, %arg2: memref<16x8xbf16, #tpu.memory_space<vmem>>, %arg3: memref<8x128xbf16, #tpu.memory_space<vmem>>, %arg4: memref<1x128xf32, #tpu.memory_space<vmem>>, %arg5: memref<32x128xf32, #tpu.memory_space<any>>, %arg6: memref<2x16x16xbf16, #tpu.memory_space<vmem>>, %arg7: memref<2x128x128xbf16, #tpu.memory_space<vmem>>, %arg8: memref<2x1x128xf32, #tpu.memory_space<vmem>>, %arg9: memref<2x256x128xbf16, #tpu.memory_space<vmem>>, %arg10: memref<2x1x128xf32, #tpu.memory_space<vmem>>, %arg11: memref<32x1xi32, #tpu.memory_space<vmem>>, %arg12: memref<16x1xf32, #tpu.memory_space<vmem>>, %arg13: memref<8x1xf32, #tpu.memory_space<vmem>>, %arg14: memref<16x128xf32, #tpu.memory_space<vmem>>, %arg15: memref<!tpu.dma_semaphore, #tpu.memory_space<semaphore_mem>>) attributes {dimension_semantics = [#tpu.dimension_semantics<arbitrary>], iteration_bounds = array<i64: 1>, scalar_prefetch = 1 : i64, scratch_operands = 2 : i64, tpu.core_type = #tpu.core_type<tc>, window_params = [{pipeline_mode = #tpu.pipeline_mode<synchronous>, transform_indices = @transform_0, window_bounds = array<i64: 16, 8>}, {pipeline_mode = #tpu.pipeline_mode<synchronous>, transform_indices = @transform_1, window_bounds = array<i64: 8, 128>}, {pipeline_mode = #tpu.pipeline_mode<synchronous>, transform_indices = @transform_2, window_bounds = array<i64: 1, 128>}, {}, {pipeline_mode = #tpu.pipeline_mode<synchronous>, transform_indices = @transform_4, window_bounds = array<i64: 2, 16, 16>}, {pipeline_mode = #tpu.pipeline_mode<synchronous>, transform_indices = @transform_5, window_bounds = array<i64: 2, 128, 128>}, {pipeline_mode = #tpu.pipeline_mode<synchronous>, transform_indices = @transform_6, window_bounds = array<i64: 2, 1, 128>}, {pipeline_mode = #tpu.pipeline_mode<synchronous>, transform_indices = @transform_7, window_bounds = array<i64: 2, 256, 128>}, {pipeline_mode = #tpu.pipeline_mode<synchronous>, transform_indices = @transform_8, window_bounds = array<i64: 2, 1, 128>}, {pipeline_mode = #tpu.pipeline_mode<synchronous>, transform_indices = @transform_9, window_bounds = array<i64: 32, 1>}, {pipeline_mode = #tpu.pipeline_mode<synchronous>, transform_indices = @transform_10, window_bounds = array<i64: 16, 1>}, {pipeline_mode = #tpu.pipeline_mode<synchronous>, transform_indices = @transform_11, window_bounds = array<i64: 8, 1>}]} {
    %c0 = arith.constant 0 : index
    %0 = memref.load %arg1[%c0] : memref<16xi32, #tpu.memory_space<smem>>
    %c0_i32 = arith.constant 0 : i32
    %1 = tpu.memref_slice %arg5[%0, %c0_i32] : memref<32x128xf32, #tpu.memory_space<any>> -> memref<1x128xf32, #tpu.memory_space<any>>
    %c0_i32_0 = arith.constant 0 : i32
    %c0_i32_1 = arith.constant 0 : i32
    %2 = tpu.memref_slice %arg14[%c0_i32_0, %c0_i32_1] : memref<16x128xf32, #tpu.memory_space<vmem>> -> memref<1x128xf32, #tpu.memory_space<vmem>>
    tpu.enqueue_dma source(%1 : memref<1x128xf32, #tpu.memory_space<any>>) target(%2 : memref<1x128xf32, #tpu.memory_space<vmem>>) target_semaphore(%arg15 : memref<!tpu.dma_semaphore, #tpu.memory_space<semaphore_mem>>)
    %c1 = arith.constant 1 : index
    %3 = memref.load %arg1[%c1] : memref<16xi32, #tpu.memory_space<smem>>
    %c0_i32_2 = arith.constant 0 : i32
    %4 = tpu.memref_slice %arg5[%3, %c0_i32_2] : memref<32x128xf32, #tpu.memory_space<any>> -> memref<1x128xf32, #tpu.memory_space<any>>
    %c1_i32 = arith.constant 1 : i32
    %c0_i32_3 = arith.constant 0 : i32
    %5 = tpu.memref_slice %arg14[%c1_i32, %c0_i32_3] : memref<16x128xf32, #tpu.memory_space<vmem>> -> memref<1x128xf32, #tpu.memory_space<vmem>>
    tpu.enqueue_dma source(%4 : memref<1x128xf32, #tpu.memory_space<any>>) target(%5 : memref<1x128xf32, #tpu.memory_space<vmem>>) target_semaphore(%arg15 : memref<!tpu.dma_semaphore, #tpu.memory_space<semaphore_mem>>)
    %c2 = arith.constant 2 : index
    %6 = memref.load %arg1[%c2] : memref<16xi32, #tpu.memory_space<smem>>
    %c0_i32_4 = arith.constant 0 : i32
    %7 = tpu.memref_slice %arg5[%6, %c0_i32_4] : memref<32x128xf32, #tpu.memory_space<any>> -> memref<1x128xf32, #tpu.memory_space<any>>
    %c2_i32 = arith.constant 2 : i32
    %c0_i32_5 = arith.constant 0 : i32
    %8 = tpu.memref_slice %arg14[%c2_i32, %c0_i32_5] : memref<16x128xf32, #tpu.memory_space<vmem>> -> memref<1x128xf32, #tpu.memory_space<vmem>>
    tpu.enqueue_dma source(%7 : memref<1x128xf32, #tpu.memory_space<any>>) target(%8 : memref<1x128xf32, #tpu.memory_space<vmem>>) target_semaphore(%arg15 : memref<!tpu.dma_semaphore, #tpu.memory_space<semaphore_mem>>)
    %c3 = arith.constant 3 : index
    %9 = memref.load %arg1[%c3] : memref<16xi32, #tpu.memory_space<smem>>
    %c0_i32_6 = arith.constant 0 : i32
    %10 = tpu.memref_slice %arg5[%9, %c0_i32_6] : memref<32x128xf32, #tpu.memory_space<any>> -> memref<1x128xf32, #tpu.memory_space<any>>
    %c3_i32 = arith.constant 3 : i32
    %c0_i32_7 = arith.constant 0 : i32
    %11 = tpu.memref_slice %arg14[%c3_i32, %c0_i32_7] : memref<16x128xf32, #tpu.memory_space<vmem>> -> memref<1x128xf32, #tpu.memory_space<vmem>>
    tpu.enqueue_dma source(%10 : memref<1x128xf32, #tpu.memory_space<any>>) target(%11 : memref<1x128xf32, #tpu.memory_space<vmem>>) target_semaphore(%arg15 : memref<!tpu.dma_semaphore, #tpu.memory_space<semaphore_mem>>)
    %c4 = arith.constant 4 : index
    %12 = memref.load %arg1[%c4] : memref<16xi32, #tpu.memory_space<smem>>
    %c0_i32_8 = arith.constant 0 : i32
    %13 = tpu.memref_slice %arg5[%12, %c0_i32_8] : memref<32x128xf32, #tpu.memory_space<any>> -> memref<1x128xf32, #tpu.memory_space<any>>
    %c4_i32 = arith.constant 4 : i32
    %c0_i32_9 = arith.constant 0 : i32
    %14 = tpu.memref_slice %arg14[%c4_i32, %c0_i32_9] : memref<16x128xf32, #tpu.memory_space<vmem>> -> memref<1x128xf32, #tpu.memory_space<vmem>>
    tpu.enqueue_dma source(%13 : memref<1x128xf32, #tpu.memory_space<any>>) target(%14 : memref<1x128xf32, #tpu.memory_space<vmem>>) target_semaphore(%arg15 : memref<!tpu.dma_semaphore, #tpu.memory_space<semaphore_mem>>)
    %c5 = arith.constant 5 : index
    %15 = memref.load %arg1[%c5] : memref<16xi32, #tpu.memory_space<smem>>
    %c0_i32_10 = arith.constant 0 : i32
    %16 = tpu.memref_slice %arg5[%15, %c0_i32_10] : memref<32x128xf32, #tpu.memory_space<any>> -> memref<1x128xf32, #tpu.memory_space<any>>
    %c5_i32 = arith.constant 5 : i32
    %c0_i32_11 = arith.constant 0 : i32
    %17 = tpu.memref_slice %arg14[%c5_i32, %c0_i32_11] : memref<16x128xf32, #tpu.memory_space<vmem>> -> memref<1x128xf32, #tpu.memory_space<vmem>>
    tpu.enqueue_dma source(%16 : memref<1x128xf32, #tpu.memory_space<any>>) target(%17 : memref<1x128xf32, #tpu.memory_space<vmem>>) target_semaphore(%arg15 : memref<!tpu.dma_semaphore, #tpu.memory_space<semaphore_mem>>)
    %c6 = arith.constant 6 : index
    %18 = memref.load %arg1[%c6] : memref<16xi32, #tpu.memory_space<smem>>
    %c0_i32_12 = arith.constant 0 : i32
    %19 = tpu.memref_slice %arg5[%18, %c0_i32_12] : memref<32x128xf32, #tpu.memory_space<any>> -> memref<1x128xf32, #tpu.memory_space<any>>
    %c6_i32 = arith.constant 6 : i32
    %c0_i32_13 = arith.constant 0 : i32
    %20 = tpu.memref_slice %arg14[%c6_i32, %c0_i32_13] : memref<16x128xf32, #tpu.memory_space<vmem>> -> memref<1x128xf32, #tpu.memory_space<vmem>>
    tpu.enqueue_dma source(%19 : memref<1x128xf32, #tpu.memory_space<any>>) target(%20 : memref<1x128xf32, #tpu.memory_space<vmem>>) target_semaphore(%arg15 : memref<!tpu.dma_semaphore, #tpu.memory_space<semaphore_mem>>)
    %c7 = arith.constant 7 : index
    %21 = memref.load %arg1[%c7] : memref<16xi32, #tpu.memory_space<smem>>
    %c0_i32_14 = arith.constant 0 : i32
    %22 = tpu.memref_slice %arg5[%21, %c0_i32_14] : memref<32x128xf32, #tpu.memory_space<any>> -> memref<1x128xf32, #tpu.memory_space<any>>
    %c7_i32 = arith.constant 7 : i32
    %c0_i32_15 = arith.constant 0 : i32
    %23 = tpu.memref_slice %arg14[%c7_i32, %c0_i32_15] : memref<16x128xf32, #tpu.memory_space<vmem>> -> memref<1x128xf32, #tpu.memory_space<vmem>>
    tpu.enqueue_dma source(%22 : memref<1x128xf32, #tpu.memory_space<any>>) target(%23 : memref<1x128xf32, #tpu.memory_space<vmem>>) target_semaphore(%arg15 : memref<!tpu.dma_semaphore, #tpu.memory_space<semaphore_mem>>)
    %c8 = arith.constant 8 : index
    %24 = memref.load %arg1[%c8] : memref<16xi32, #tpu.memory_space<smem>>
    %c0_i32_16 = arith.constant 0 : i32
    %25 = tpu.memref_slice %arg5[%24, %c0_i32_16] : memref<32x128xf32, #tpu.memory_space<any>> -> memref<1x128xf32, #tpu.memory_space<any>>
    %c8_i32 = arith.constant 8 : i32
    %c0_i32_17 = arith.constant 0 : i32
    %26 = tpu.memref_slice %arg14[%c8_i32, %c0_i32_17] : memref<16x128xf32, #tpu.memory_space<vmem>> -> memref<1x128xf32, #tpu.memory_space<vmem>>
    tpu.enqueue_dma source(%25 : memref<1x128xf32, #tpu.memory_space<any>>) target(%26 : memref<1x128xf32, #tpu.memory_space<vmem>>) target_semaphore(%arg15 : memref<!tpu.dma_semaphore, #tpu.memory_space<semaphore_mem>>)
    %c9 = arith.constant 9 : index
    %27 = memref.load %arg1[%c9] : memref<16xi32, #tpu.memory_space<smem>>
    %c0_i32_18 = arith.constant 0 : i32
    %28 = tpu.memref_slice %arg5[%27, %c0_i32_18] : memref<32x128xf32, #tpu.memory_space<any>> -> memref<1x128xf32, #tpu.memory_space<any>>
    %c9_i32 = arith.constant 9 : i32
    %c0_i32_19 = arith.constant 0 : i32
    %29 = tpu.memref_slice %arg14[%c9_i32, %c0_i32_19] : memref<16x128xf32, #tpu.memory_space<vmem>> -> memref<1x128xf32, #tpu.memory_space<vmem>>
    tpu.enqueue_dma source(%28 : memref<1x128xf32, #tpu.memory_space<any>>) target(%29 : memref<1x128xf32, #tpu.memory_space<vmem>>) target_semaphore(%arg15 : memref<!tpu.dma_semaphore, #tpu.memory_space<semaphore_mem>>)
    %c10 = arith.constant 10 : index
    %30 = memref.load %arg1[%c10] : memref<16xi32, #tpu.memory_space<smem>>
    %c0_i32_20 = arith.constant 0 : i32
    %31 = tpu.memref_slice %arg5[%30, %c0_i32_20] : memref<32x128xf32, #tpu.memory_space<any>> -> memref<1x128xf32, #tpu.memory_space<any>>
    %c10_i32 = arith.constant 10 : i32
    %c0_i32_21 = arith.constant 0 : i32
    %32 = tpu.memref_slice %arg14[%c10_i32, %c0_i32_21] : memref<16x128xf32, #tpu.memory_space<vmem>> -> memref<1x128xf32, #tpu.memory_space<vmem>>
    tpu.enqueue_dma source(%31 : memref<1x128xf32, #tpu.memory_space<any>>) target(%32 : memref<1x128xf32, #tpu.memory_space<vmem>>) target_semaphore(%arg15 : memref<!tpu.dma_semaphore, #tpu.memory_space<semaphore_mem>>)
    %c11 = arith.constant 11 : index
    %33 = memref.load %arg1[%c11] : memref<16xi32, #tpu.memory_space<smem>>
    %c0_i32_22 = arith.constant 0 : i32
    %34 = tpu.memref_slice %arg5[%33, %c0_i32_22] : memref<32x128xf32, #tpu.memory_space<any>> -> memref<1x128xf32, #tpu.memory_space<any>>
    %c11_i32 = arith.constant 11 : i32
    %c0_i32_23 = arith.constant 0 : i32
    %35 = tpu.memref_slice %arg14[%c11_i32, %c0_i32_23] : memref<16x128xf32, #tpu.memory_space<vmem>> -> memref<1x128xf32, #tpu.memory_space<vmem>>
    tpu.enqueue_dma source(%34 : memref<1x128xf32, #tpu.memory_space<any>>) target(%35 : memref<1x128xf32, #tpu.memory_space<vmem>>) target_semaphore(%arg15 : memref<!tpu.dma_semaphore, #tpu.memory_space<semaphore_mem>>)
    %c12 = arith.constant 12 : index
    %36 = memref.load %arg1[%c12] : memref<16xi32, #tpu.memory_space<smem>>
    %c0_i32_24 = arith.constant 0 : i32
    %37 = tpu.memref_slice %arg5[%36, %c0_i32_24] : memref<32x128xf32, #tpu.memory_space<any>> -> memref<1x128xf32, #tpu.memory_space<any>>
    %c12_i32 = arith.constant 12 : i32
    %c0_i32_25 = arith.constant 0 : i32
    %38 = tpu.memref_slice %arg14[%c12_i32, %c0_i32_25] : memref<16x128xf32, #tpu.memory_space<vmem>> -> memref<1x128xf32, #tpu.memory_space<vmem>>
    tpu.enqueue_dma source(%37 : memref<1x128xf32, #tpu.memory_space<any>>) target(%38 : memref<1x128xf32, #tpu.memory_space<vmem>>) target_semaphore(%arg15 : memref<!tpu.dma_semaphore, #tpu.memory_space<semaphore_mem>>)
    %c13 = arith.constant 13 : index
    %39 = memref.load %arg1[%c13] : memref<16xi32, #tpu.memory_space<smem>>
    %c0_i32_26 = arith.constant 0 : i32
    %40 = tpu.memref_slice %arg5[%39, %c0_i32_26] : memref<32x128xf32, #tpu.memory_space<any>> -> memref<1x128xf32, #tpu.memory_space<any>>
    %c13_i32 = arith.constant 13 : i32
    %c0_i32_27 = arith.constant 0 : i32
    %41 = tpu.memref_slice %arg14[%c13_i32, %c0_i32_27] : memref<16x128xf32, #tpu.memory_space<vmem>> -> memref<1x128xf32, #tpu.memory_space<vmem>>
    tpu.enqueue_dma source(%40 : memref<1x128xf32, #tpu.memory_space<any>>) target(%41 : memref<1x128xf32, #tpu.memory_space<vmem>>) target_semaphore(%arg15 : memref<!tpu.dma_semaphore, #tpu.memory_space<semaphore_mem>>)
    %c14 = arith.constant 14 : index
    %42 = memref.load %arg1[%c14] : memref<16xi32, #tpu.memory_space<smem>>
    %c0_i32_28 = arith.constant 0 : i32
    %43 = tpu.memref_slice %arg5[%42, %c0_i32_28] : memref<32x128xf32, #tpu.memory_space<any>> -> memref<1x128xf32, #tpu.memory_space<any>>
    %c14_i32 = arith.constant 14 : i32
    %c0_i32_29 = arith.constant 0 : i32
    %44 = tpu.memref_slice %arg14[%c14_i32, %c0_i32_29] : memref<16x128xf32, #tpu.memory_space<vmem>> -> memref<1x128xf32, #tpu.memory_space<vmem>>
    tpu.enqueue_dma source(%43 : memref<1x128xf32, #tpu.memory_space<any>>) target(%44 : memref<1x128xf32, #tpu.memory_space<vmem>>) target_semaphore(%arg15 : memref<!tpu.dma_semaphore, #tpu.memory_space<semaphore_mem>>)
    %c15 = arith.constant 15 : index
    %45 = memref.load %arg1[%c15] : memref<16xi32, #tpu.memory_space<smem>>
    %c0_i32_30 = arith.constant 0 : i32
    %46 = tpu.memref_slice %arg5[%45, %c0_i32_30] : memref<32x128xf32, #tpu.memory_space<any>> -> memref<1x128xf32, #tpu.memory_space<any>>
    %c15_i32 = arith.constant 15 : i32
    %c0_i32_31 = arith.constant 0 : i32
    %47 = tpu.memref_slice %arg14[%c15_i32, %c0_i32_31] : memref<16x128xf32, #tpu.memory_space<vmem>> -> memref<1x128xf32, #tpu.memory_space<vmem>>
    tpu.enqueue_dma source(%46 : memref<1x128xf32, #tpu.memory_space<any>>) target(%47 : memref<1x128xf32, #tpu.memory_space<vmem>>) target_semaphore(%arg15 : memref<!tpu.dma_semaphore, #tpu.memory_space<semaphore_mem>>)
    %c0_32 = arith.constant 0 : index
    %c0_33 = arith.constant 0 : index
    %48 = vector.load %arg2[%c0_32, %c0_33] : memref<16x8xbf16, #tpu.memory_space<vmem>>, vector<16x8xbf16>
    %c0_34 = arith.constant 0 : index
    %c0_35 = arith.constant 0 : index
    %49 = vector.load %arg3[%c0_34, %c0_35] : memref<8x128xbf16, #tpu.memory_space<vmem>>, vector<8x128xbf16>
    %cst = arith.constant dense<0.000000e+00> : vector<16x128xf32>
    %50 = tpu.matmul %48, %49, %cst {dimension_numbers = #tpu.dot_dimension_numbers<[1], [0], [0], [1], [0, 0, 1, 1], [], []>} : vector<16x8xbf16>, vector<8x128xbf16>, vector<16x128xf32> -> vector<16x128xf32>
    %c0_i32_36 = arith.constant 0 : i32
    %51 = tpu.memref_slice %arg5[%0, %c0_i32_36] : memref<32x128xf32, #tpu.memory_space<any>> -> memref<1x128xf32, #tpu.memory_space<any>>
    %c0_i32_37 = arith.constant 0 : i32
    %c0_i32_38 = arith.constant 0 : i32
    %52 = tpu.memref_slice %arg14[%c0_i32_37, %c0_i32_38] : memref<16x128xf32, #tpu.memory_space<vmem>> -> memref<1x128xf32, #tpu.memory_space<vmem>>
    tpu.wait_dma2 semaphore(%arg15 : memref<!tpu.dma_semaphore, #tpu.memory_space<semaphore_mem>>) src(%51 : memref<1x128xf32, #tpu.memory_space<any>>) dst(%52 : memref<1x128xf32, #tpu.memory_space<vmem>>)
    %c0_i32_39 = arith.constant 0 : i32
    %53 = tpu.memref_slice %arg5[%3, %c0_i32_39] : memref<32x128xf32, #tpu.memory_space<any>> -> memref<1x128xf32, #tpu.memory_space<any>>
    %c1_i32_40 = arith.constant 1 : i32
    %c0_i32_41 = arith.constant 0 : i32
    %54 = tpu.memref_slice %arg14[%c1_i32_40, %c0_i32_41] : memref<16x128xf32, #tpu.memory_space<vmem>> -> memref<1x128xf32, #tpu.memory_space<vmem>>
    tpu.wait_dma2 semaphore(%arg15 : memref<!tpu.dma_semaphore, #tpu.memory_space<semaphore_mem>>) src(%53 : memref<1x128xf32, #tpu.memory_space<any>>) dst(%54 : memref<1x128xf32, #tpu.memory_space<vmem>>)
    %c0_i32_42 = arith.constant 0 : i32
    %55 = tpu.memref_slice %arg5[%6, %c0_i32_42] : memref<32x128xf32, #tpu.memory_space<any>> -> memref<1x128xf32, #tpu.memory_space<any>>
    %c2_i32_43 = arith.constant 2 : i32
    %c0_i32_44 = arith.constant 0 : i32
    %56 = tpu.memref_slice %arg14[%c2_i32_43, %c0_i32_44] : memref<16x128xf32, #tpu.memory_space<vmem>> -> memref<1x128xf32, #tpu.memory_space<vmem>>
    tpu.wait_dma2 semaphore(%arg15 : memref<!tpu.dma_semaphore, #tpu.memory_space<semaphore_mem>>) src(%55 : memref<1x128xf32, #tpu.memory_space<any>>) dst(%56 : memref<1x128xf32, #tpu.memory_space<vmem>>)
    %c0_i32_45 = arith.constant 0 : i32
    %57 = tpu.memref_slice %arg5[%9, %c0_i32_45] : memref<32x128xf32, #tpu.memory_space<any>> -> memref<1x128xf32, #tpu.memory_space<any>>
    %c3_i32_46 = arith.constant 3 : i32
    %c0_i32_47 = arith.constant 0 : i32
    %58 = tpu.memref_slice %arg14[%c3_i32_46, %c0_i32_47] : memref<16x128xf32, #tpu.memory_space<vmem>> -> memref<1x128xf32, #tpu.memory_space<vmem>>
    tpu.wait_dma2 semaphore(%arg15 : memref<!tpu.dma_semaphore, #tpu.memory_space<semaphore_mem>>) src(%57 : memref<1x128xf32, #tpu.memory_space<any>>) dst(%58 : memref<1x128xf32, #tpu.memory_space<vmem>>)
    %c0_i32_48 = arith.constant 0 : i32
    %59 = tpu.memref_slice %arg5[%12, %c0_i32_48] : memref<32x128xf32, #tpu.memory_space<any>> -> memref<1x128xf32, #tpu.memory_space<any>>
    %c4_i32_49 = arith.constant 4 : i32
    %c0_i32_50 = arith.constant 0 : i32
    %60 = tpu.memref_slice %arg14[%c4_i32_49, %c0_i32_50] : memref<16x128xf32, #tpu.memory_space<vmem>> -> memref<1x128xf32, #tpu.memory_space<vmem>>
    tpu.wait_dma2 semaphore(%arg15 : memref<!tpu.dma_semaphore, #tpu.memory_space<semaphore_mem>>) src(%59 : memref<1x128xf32, #tpu.memory_space<any>>) dst(%60 : memref<1x128xf32, #tpu.memory_space<vmem>>)
    %c0_i32_51 = arith.constant 0 : i32
    %61 = tpu.memref_slice %arg5[%15, %c0_i32_51] : memref<32x128xf32, #tpu.memory_space<any>> -> memref<1x128xf32, #tpu.memory_space<any>>
    %c5_i32_52 = arith.constant 5 : i32
    %c0_i32_53 = arith.constant 0 : i32
    %62 = tpu.memref_slice %arg14[%c5_i32_52, %c0_i32_53] : memref<16x128xf32, #tpu.memory_space<vmem>> -> memref<1x128xf32, #tpu.memory_space<vmem>>
    tpu.wait_dma2 semaphore(%arg15 : memref<!tpu.dma_semaphore, #tpu.memory_space<semaphore_mem>>) src(%61 : memref<1x128xf32, #tpu.memory_space<any>>) dst(%62 : memref<1x128xf32, #tpu.memory_space<vmem>>)
    %c0_i32_54 = arith.constant 0 : i32
    %63 = tpu.memref_slice %arg5[%18, %c0_i32_54] : memref<32x128xf32, #tpu.memory_space<any>> -> memref<1x128xf32, #tpu.memory_space<any>>
    %c6_i32_55 = arith.constant 6 : i32
    %c0_i32_56 = arith.constant 0 : i32
    %64 = tpu.memref_slice %arg14[%c6_i32_55, %c0_i32_56] : memref<16x128xf32, #tpu.memory_space<vmem>> -> memref<1x128xf32, #tpu.memory_space<vmem>>
    tpu.wait_dma2 semaphore(%arg15 : memref<!tpu.dma_semaphore, #tpu.memory_space<semaphore_mem>>) src(%63 : memref<1x128xf32, #tpu.memory_space<any>>) dst(%64 : memref<1x128xf32, #tpu.memory_space<vmem>>)
    %c0_i32_57 = arith.constant 0 : i32
    %65 = tpu.memref_slice %arg5[%21, %c0_i32_57] : memref<32x128xf32, #tpu.memory_space<any>> -> memref<1x128xf32, #tpu.memory_space<any>>
    %c7_i32_58 = arith.constant 7 : i32
    %c0_i32_59 = arith.constant 0 : i32
    %66 = tpu.memref_slice %arg14[%c7_i32_58, %c0_i32_59] : memref<16x128xf32, #tpu.memory_space<vmem>> -> memref<1x128xf32, #tpu.memory_space<vmem>>
    tpu.wait_dma2 semaphore(%arg15 : memref<!tpu.dma_semaphore, #tpu.memory_space<semaphore_mem>>) src(%65 : memref<1x128xf32, #tpu.memory_space<any>>) dst(%66 : memref<1x128xf32, #tpu.memory_space<vmem>>)
    %c0_i32_60 = arith.constant 0 : i32
    %67 = tpu.memref_slice %arg5[%24, %c0_i32_60] : memref<32x128xf32, #tpu.memory_space<any>> -> memref<1x128xf32, #tpu.memory_space<any>>
    %c8_i32_61 = arith.constant 8 : i32
    %c0_i32_62 = arith.constant 0 : i32
    %68 = tpu.memref_slice %arg14[%c8_i32_61, %c0_i32_62] : memref<16x128xf32, #tpu.memory_space<vmem>> -> memref<1x128xf32, #tpu.memory_space<vmem>>
    tpu.wait_dma2 semaphore(%arg15 : memref<!tpu.dma_semaphore, #tpu.memory_space<semaphore_mem>>) src(%67 : memref<1x128xf32, #tpu.memory_space<any>>) dst(%68 : memref<1x128xf32, #tpu.memory_space<vmem>>)
    %c0_i32_63 = arith.constant 0 : i32
    %69 = tpu.memref_slice %arg5[%27, %c0_i32_63] : memref<32x128xf32, #tpu.memory_space<any>> -> memref<1x128xf32, #tpu.memory_space<any>>
    %c9_i32_64 = arith.constant 9 : i32
    %c0_i32_65 = arith.constant 0 : i32
    %70 = tpu.memref_slice %arg14[%c9_i32_64, %c0_i32_65] : memref<16x128xf32, #tpu.memory_space<vmem>> -> memref<1x128xf32, #tpu.memory_space<vmem>>
    tpu.wait_dma2 semaphore(%arg15 : memref<!tpu.dma_semaphore, #tpu.memory_space<semaphore_mem>>) src(%69 : memref<1x128xf32, #tpu.memory_space<any>>) dst(%70 : memref<1x128xf32, #tpu.memory_space<vmem>>)
    %c0_i32_66 = arith.constant 0 : i32
    %71 = tpu.memref_slice %arg5[%30, %c0_i32_66] : memref<32x128xf32, #tpu.memory_space<any>> -> memref<1x128xf32, #tpu.memory_space<any>>
    %c10_i32_67 = arith.constant 10 : i32
    %c0_i32_68 = arith.constant 0 : i32
    %72 = tpu.memref_slice %arg14[%c10_i32_67, %c0_i32_68] : memref<16x128xf32, #tpu.memory_space<vmem>> -> memref<1x128xf32, #tpu.memory_space<vmem>>
    tpu.wait_dma2 semaphore(%arg15 : memref<!tpu.dma_semaphore, #tpu.memory_space<semaphore_mem>>) src(%71 : memref<1x128xf32, #tpu.memory_space<any>>) dst(%72 : memref<1x128xf32, #tpu.memory_space<vmem>>)
    %c0_i32_69 = arith.constant 0 : i32
    %73 = tpu.memref_slice %arg5[%33, %c0_i32_69] : memref<32x128xf32, #tpu.memory_space<any>> -> memref<1x128xf32, #tpu.memory_space<any>>
    %c11_i32_70 = arith.constant 11 : i32
    %c0_i32_71 = arith.constant 0 : i32
    %74 = tpu.memref_slice %arg14[%c11_i32_70, %c0_i32_71] : memref<16x128xf32, #tpu.memory_space<vmem>> -> memref<1x128xf32, #tpu.memory_space<vmem>>
    tpu.wait_dma2 semaphore(%arg15 : memref<!tpu.dma_semaphore, #tpu.memory_space<semaphore_mem>>) src(%73 : memref<1x128xf32, #tpu.memory_space<any>>) dst(%74 : memref<1x128xf32, #tpu.memory_space<vmem>>)
    %c0_i32_72 = arith.constant 0 : i32
    %75 = tpu.memref_slice %arg5[%36, %c0_i32_72] : memref<32x128xf32, #tpu.memory_space<any>> -> memref<1x128xf32, #tpu.memory_space<any>>
    %c12_i32_73 = arith.constant 12 : i32
    %c0_i32_74 = arith.constant 0 : i32
    %76 = tpu.memref_slice %arg14[%c12_i32_73, %c0_i32_74] : memref<16x128xf32, #tpu.memory_space<vmem>> -> memref<1x128xf32, #tpu.memory_space<vmem>>
    tpu.wait_dma2 semaphore(%arg15 : memref<!tpu.dma_semaphore, #tpu.memory_space<semaphore_mem>>) src(%75 : memref<1x128xf32, #tpu.memory_space<any>>) dst(%76 : memref<1x128xf32, #tpu.memory_space<vmem>>)
    %c0_i32_75 = arith.constant 0 : i32
    %77 = tpu.memref_slice %arg5[%39, %c0_i32_75] : memref<32x128xf32, #tpu.memory_space<any>> -> memref<1x128xf32, #tpu.memory_space<any>>
    %c13_i32_76 = arith.constant 13 : i32
    %c0_i32_77 = arith.constant 0 : i32
    %78 = tpu.memref_slice %arg14[%c13_i32_76, %c0_i32_77] : memref<16x128xf32, #tpu.memory_space<vmem>> -> memref<1x128xf32, #tpu.memory_space<vmem>>
    tpu.wait_dma2 semaphore(%arg15 : memref<!tpu.dma_semaphore, #tpu.memory_space<semaphore_mem>>) src(%77 : memref<1x128xf32, #tpu.memory_space<any>>) dst(%78 : memref<1x128xf32, #tpu.memory_space<vmem>>)
    %c0_i32_78 = arith.constant 0 : i32
    %79 = tpu.memref_slice %arg5[%42, %c0_i32_78] : memref<32x128xf32, #tpu.memory_space<any>> -> memref<1x128xf32, #tpu.memory_space<any>>
    %c14_i32_79 = arith.constant 14 : i32
    %c0_i32_80 = arith.constant 0 : i32
    %80 = tpu.memref_slice %arg14[%c14_i32_79, %c0_i32_80] : memref<16x128xf32, #tpu.memory_space<vmem>> -> memref<1x128xf32, #tpu.memory_space<vmem>>
    tpu.wait_dma2 semaphore(%arg15 : memref<!tpu.dma_semaphore, #tpu.memory_space<semaphore_mem>>) src(%79 : memref<1x128xf32, #tpu.memory_space<any>>) dst(%80 : memref<1x128xf32, #tpu.memory_space<vmem>>)
    %c0_i32_81 = arith.constant 0 : i32
    %81 = tpu.memref_slice %arg5[%45, %c0_i32_81] : memref<32x128xf32, #tpu.memory_space<any>> -> memref<1x128xf32, #tpu.memory_space<any>>
    %c15_i32_82 = arith.constant 15 : i32
    %c0_i32_83 = arith.constant 0 : i32
    %82 = tpu.memref_slice %arg14[%c15_i32_82, %c0_i32_83] : memref<16x128xf32, #tpu.memory_space<vmem>> -> memref<1x128xf32, #tpu.memory_space<vmem>>
    tpu.wait_dma2 semaphore(%arg15 : memref<!tpu.dma_semaphore, #tpu.memory_space<semaphore_mem>>) src(%81 : memref<1x128xf32, #tpu.memory_space<any>>) dst(%82 : memref<1x128xf32, #tpu.memory_space<vmem>>)
    %c0_84 = arith.constant 0 : index
    %c0_85 = arith.constant 0 : index
    %83 = vector.load %arg14[%c0_84, %c0_85] : memref<16x128xf32, #tpu.memory_space<vmem>>, vector<16x128xf32>
    %84 = arith.addf %83, %50 : vector<16x128xf32>
    %c0_86 = arith.constant 0 : index
    %c0_87 = arith.constant 0 : index
    %85 = vector.load %arg4[%c0_86, %c0_87] : memref<1x128xf32, #tpu.memory_space<vmem>>, vector<1x128xf32>
    %86 = vector.broadcast %85 : vector<1x128xf32> to vector<16x128xf32>
    %87 = arith.addf %84, %86 : vector<16x128xf32>
    %88 = arith.truncf %87 : vector<16x128xf32> to vector<16x128xbf16>
    %c0_88 = arith.constant 0 : index
    %c0_89 = arith.constant 0 : index
    %c0_90 = arith.constant 0 : index
    %89 = vector.load %arg7[%c0_88, %c0_89, %c0_90] : memref<2x128x128xbf16, #tpu.memory_space<vmem>>, vector<1x128x128xbf16>
    %90 = vector.shape_cast %89 : vector<1x128x128xbf16> to vector<128x128xbf16>
    %cst_91 = arith.constant dense<0.000000e+00> : vector<16x128xf32>
    %91 = tpu.matmul %88, %90, %cst_91 {dimension_numbers = #tpu.dot_dimension_numbers<[1], [0], [0], [1], [0, 0, 1, 1], [], []>} : vector<16x128xbf16>, vector<128x128xbf16>, vector<16x128xf32> -> vector<16x128xf32>
    %c0_92 = arith.constant 0 : index
    %c0_93 = arith.constant 0 : index
    %c0_94 = arith.constant 0 : index
    %92 = vector.load %arg8[%c0_92, %c0_93, %c0_94] : memref<2x1x128xf32, #tpu.memory_space<vmem>>, vector<1x1x128xf32>
    %93 = vector.shape_cast %92 : vector<1x1x128xf32> to vector<1x128xf32>
    %94 = vector.broadcast %93 : vector<1x128xf32> to vector<16x128xf32>
    %95 = arith.addf %91, %94 : vector<16x128xf32>
    %cst_95 = arith.constant 0.000000e+00 : f32
    %96 = vector.broadcast %cst_95 : f32 to vector<16x128xf32>
    %97 = arith.maximumf %95, %96 : vector<16x128xf32>
    %c0_96 = arith.constant 0 : index
    %c0_97 = arith.constant 0 : index
    %c0_98 = arith.constant 0 : index
    %98 = vector.load %arg6[%c0_96, %c0_97, %c0_98] : memref<2x16x16xbf16, #tpu.memory_space<vmem>>, vector<1x16x16xbf16>
    %99 = vector.shape_cast %98 : vector<1x16x16xbf16> to vector<16x16xbf16>
    %100 = arith.truncf %97 : vector<16x128xf32> to vector<16x128xbf16>
    %cst_99 = arith.constant dense<0.000000e+00> : vector<16x128xf32>
    %101 = tpu.matmul %99, %100, %cst_99 {dimension_numbers = #tpu.dot_dimension_numbers<[1], [0], [0], [1], [0, 0, 1, 1], [], []>} : vector<16x16xbf16>, vector<16x128xbf16>, vector<16x128xf32> -> vector<16x128xf32>
    %102 = tpu.concatenate %101, %87 in 1 : vector<16x128xf32>, vector<16x128xf32> -> vector<16x256xf32>
    %103 = arith.truncf %102 : vector<16x256xf32> to vector<16x256xbf16>
    %c0_100 = arith.constant 0 : index
    %c0_101 = arith.constant 0 : index
    %c0_102 = arith.constant 0 : index
    %104 = vector.load %arg9[%c0_100, %c0_101, %c0_102] : memref<2x256x128xbf16, #tpu.memory_space<vmem>>, vector<1x256x128xbf16>
    %105 = vector.shape_cast %104 : vector<1x256x128xbf16> to vector<256x128xbf16>
    %cst_103 = arith.constant dense<0.000000e+00> : vector<16x128xf32>
    %106 = tpu.matmul %103, %105, %cst_103 {dimension_numbers = #tpu.dot_dimension_numbers<[1], [0], [0], [1], [0, 0, 1, 1], [], []>} : vector<16x256xbf16>, vector<256x128xbf16>, vector<16x128xf32> -> vector<16x128xf32>
    %c0_104 = arith.constant 0 : index
    %c0_105 = arith.constant 0 : index
    %c0_106 = arith.constant 0 : index
    %107 = vector.load %arg10[%c0_104, %c0_105, %c0_106] : memref<2x1x128xf32, #tpu.memory_space<vmem>>, vector<1x1x128xf32>
    %108 = vector.shape_cast %107 : vector<1x1x128xf32> to vector<1x128xf32>
    %109 = vector.broadcast %108 : vector<1x128xf32> to vector<16x128xf32>
    %110 = arith.addf %106, %109 : vector<16x128xf32>
    %cst_107 = arith.constant 0.000000e+00 : f32
    %111 = vector.broadcast %cst_107 : f32 to vector<16x128xf32>
    %112 = arith.maximumf %110, %111 : vector<16x128xf32>
    %113 = arith.mulf %112, %112 : vector<16x128xf32>
    %cst_108 = arith.constant dense<0.000000e+00> : vector<16xf32>
    %114 = vector.multi_reduction <add>, %113, %cst_108 [1] : vector<16x128xf32> to vector<16xf32>
    %115 = vector.shape_cast %114 : vector<16xf32> to vector<16x1xf32>
    %116 = math.sqrt %115 : vector<16x1xf32>
    %cst_109 = arith.constant 0.000000e+00 : f32
    %117 = vector.broadcast %cst_109 : f32 to vector<16x1xf32>
    %118 = arith.cmpf oeq, %116, %117 : vector<16x1xf32>
    %cst_110 = arith.constant 1.000000e+00 : f32
    %119 = vector.broadcast %cst_110 : f32 to vector<16x1xf32>
    %120 = arith.select %118, %119, %116 : vector<16x1xi1>, vector<16x1xf32>
    %121 = vector.broadcast %120 : vector<16x1xf32> to vector<16x128xf32>
    %122 = arith.divf %112, %121 : vector<16x128xf32>
    %123 = arith.truncf %122 : vector<16x128xf32> to vector<16x128xbf16>
    %c1_111 = arith.constant 1 : index
    %c0_112 = arith.constant 0 : index
    %c0_113 = arith.constant 0 : index
    %124 = vector.load %arg7[%c1_111, %c0_112, %c0_113] : memref<2x128x128xbf16, #tpu.memory_space<vmem>>, vector<1x128x128xbf16>
    %125 = vector.shape_cast %124 : vector<1x128x128xbf16> to vector<128x128xbf16>
    %cst_114 = arith.constant dense<0.000000e+00> : vector<16x128xf32>
    %126 = tpu.matmul %123, %125, %cst_114 {dimension_numbers = #tpu.dot_dimension_numbers<[1], [0], [0], [1], [0, 0, 1, 1], [], []>} : vector<16x128xbf16>, vector<128x128xbf16>, vector<16x128xf32> -> vector<16x128xf32>
    %c1_115 = arith.constant 1 : index
    %c0_116 = arith.constant 0 : index
    %c0_117 = arith.constant 0 : index
    %127 = vector.load %arg8[%c1_115, %c0_116, %c0_117] : memref<2x1x128xf32, #tpu.memory_space<vmem>>, vector<1x1x128xf32>
    %128 = vector.shape_cast %127 : vector<1x1x128xf32> to vector<1x128xf32>
    %129 = vector.broadcast %128 : vector<1x128xf32> to vector<16x128xf32>
    %130 = arith.addf %126, %129 : vector<16x128xf32>
    %cst_118 = arith.constant 0.000000e+00 : f32
    %131 = vector.broadcast %cst_118 : f32 to vector<16x128xf32>
    %132 = arith.maximumf %130, %131 : vector<16x128xf32>
    %c1_119 = arith.constant 1 : index
    %c0_120 = arith.constant 0 : index
    %c0_121 = arith.constant 0 : index
    %133 = vector.load %arg6[%c1_119, %c0_120, %c0_121] : memref<2x16x16xbf16, #tpu.memory_space<vmem>>, vector<1x16x16xbf16>
    %134 = vector.shape_cast %133 : vector<1x16x16xbf16> to vector<16x16xbf16>
    %135 = arith.truncf %132 : vector<16x128xf32> to vector<16x128xbf16>
    %cst_122 = arith.constant dense<0.000000e+00> : vector<16x128xf32>
    %136 = tpu.matmul %134, %135, %cst_122 {dimension_numbers = #tpu.dot_dimension_numbers<[1], [0], [0], [1], [0, 0, 1, 1], [], []>} : vector<16x16xbf16>, vector<16x128xbf16>, vector<16x128xf32> -> vector<16x128xf32>
    %137 = tpu.concatenate %136, %122 in 1 : vector<16x128xf32>, vector<16x128xf32> -> vector<16x256xf32>
    %138 = arith.truncf %137 : vector<16x256xf32> to vector<16x256xbf16>
    %c1_123 = arith.constant 1 : index
    %c0_124 = arith.constant 0 : index
    %c0_125 = arith.constant 0 : index
    %139 = vector.load %arg9[%c1_123, %c0_124, %c0_125] : memref<2x256x128xbf16, #tpu.memory_space<vmem>>, vector<1x256x128xbf16>
    %140 = vector.shape_cast %139 : vector<1x256x128xbf16> to vector<256x128xbf16>
    %cst_126 = arith.constant dense<0.000000e+00> : vector<16x128xf32>
    %141 = tpu.matmul %138, %140, %cst_126 {dimension_numbers = #tpu.dot_dimension_numbers<[1], [0], [0], [1], [0, 0, 1, 1], [], []>} : vector<16x256xbf16>, vector<256x128xbf16>, vector<16x128xf32> -> vector<16x128xf32>
    %c1_127 = arith.constant 1 : index
    %c0_128 = arith.constant 0 : index
    %c0_129 = arith.constant 0 : index
    %142 = vector.load %arg10[%c1_127, %c0_128, %c0_129] : memref<2x1x128xf32, #tpu.memory_space<vmem>>, vector<1x1x128xf32>
    %143 = vector.shape_cast %142 : vector<1x1x128xf32> to vector<1x128xf32>
    %144 = vector.broadcast %143 : vector<1x128xf32> to vector<16x128xf32>
    %145 = arith.addf %141, %144 : vector<16x128xf32>
    %cst_130 = arith.constant 0.000000e+00 : f32
    %146 = vector.broadcast %cst_130 : f32 to vector<16x128xf32>
    %147 = arith.maximumf %145, %146 : vector<16x128xf32>
    %148 = arith.mulf %147, %147 : vector<16x128xf32>
    %cst_131 = arith.constant dense<0.000000e+00> : vector<16xf32>
    %149 = vector.multi_reduction <add>, %148, %cst_131 [1] : vector<16x128xf32> to vector<16xf32>
    %150 = vector.shape_cast %149 : vector<16xf32> to vector<16x1xf32>
    %151 = math.sqrt %150 : vector<16x1xf32>
    %cst_132 = arith.constant 0.000000e+00 : f32
    %152 = vector.broadcast %cst_132 : f32 to vector<16x1xf32>
    %153 = arith.cmpf oeq, %151, %152 : vector<16x1xf32>
    %cst_133 = arith.constant 1.000000e+00 : f32
    %154 = vector.broadcast %cst_133 : f32 to vector<16x1xf32>
    %155 = arith.select %153, %154, %151 : vector<16x1xi1>, vector<16x1xf32>
    %156 = vector.broadcast %155 : vector<16x1xf32> to vector<16x128xf32>
    %157 = arith.divf %147, %156 : vector<16x128xf32>
    %158 = arith.addf %87, %157 : vector<16x128xf32>
    %159 = arith.truncf %158 : vector<16x128xf32> to vector<16x128xbf16>
    %160 = tpu.iota {dimensions = array<i32: 1>} : vector<32x16xi32>
    %c0_134 = arith.constant 0 : index
    %c0_135 = arith.constant 0 : index
    %161 = vector.load %arg11[%c0_134, %c0_135] : memref<32x1xi32, #tpu.memory_space<vmem>>, vector<32x1xi32>
    %162 = vector.broadcast %161 : vector<32x1xi32> to vector<32x16xi32>
    %163 = arith.cmpi eq, %160, %162 : vector<32x16xi32>
    %164 = arith.extui %163 : vector<32x16xi1> to vector<32x16xi32>
    %165 = arith.sitofp %164 : vector<32x16xi32> to vector<32x16xf32>
    %166 = arith.truncf %165 : vector<32x16xf32> to vector<32x16xbf16>
    %cst_136 = arith.constant dense<0.000000e+00> : vector<32x128xf32>
    %167 = tpu.matmul %166, %159, %cst_136 {dimension_numbers = #tpu.dot_dimension_numbers<[1], [0], [0], [1], [0, 0, 1, 1], [], []>} : vector<32x16xbf16>, vector<16x128xbf16>, vector<32x128xf32> -> vector<32x128xf32>
    %168 = vector.extract_strided_slice %167 {offsets = [0, 0], sizes = [8, 128], strides = [1, 1]} : vector<32x128xf32> to vector<8x128xf32>
    %169 = vector.extract_strided_slice %167 {offsets = [8, 0], sizes = [8, 128], strides = [1, 1]} : vector<32x128xf32> to vector<8x128xf32>
    %170 = vector.extract_strided_slice %167 {offsets = [16, 0], sizes = [8, 128], strides = [1, 1]} : vector<32x128xf32> to vector<8x128xf32>
    %171 = vector.extract_strided_slice %167 {offsets = [24, 0], sizes = [8, 128], strides = [1, 1]} : vector<32x128xf32> to vector<8x128xf32>
    %c0_137 = arith.constant 0 : index
    %c0_138 = arith.constant 0 : index
    %172 = vector.load %arg12[%c0_137, %c0_138] : memref<16x1xf32, #tpu.memory_space<vmem>>, vector<16x1xf32>
    %173 = arith.mulf %168, %169 : vector<8x128xf32>
    %cst_139 = arith.constant dense<0.000000e+00> : vector<8xf32>
    %174 = vector.multi_reduction <add>, %173, %cst_139 [1] : vector<8x128xf32> to vector<8xf32>
    %175 = vector.shape_cast %174 : vector<8xf32> to vector<8x1xf32>
    %176 = vector.extract_strided_slice %172 {offsets = [0, 0], sizes = [8, 1], strides = [1, 1]} : vector<16x1xf32> to vector<8x1xf32>
    %177 = arith.addf %175, %176 : vector<8x1xf32>
    %178 = arith.mulf %170, %171 : vector<8x128xf32>
    %cst_140 = arith.constant dense<0.000000e+00> : vector<8xf32>
    %179 = vector.multi_reduction <add>, %178, %cst_140 [1] : vector<8x128xf32> to vector<8xf32>
    %180 = vector.shape_cast %179 : vector<8xf32> to vector<8x1xf32>
    %181 = vector.extract_strided_slice %172 {offsets = [8, 0], sizes = [8, 1], strides = [1, 1]} : vector<16x1xf32> to vector<8x1xf32>
    %182 = arith.addf %180, %181 : vector<8x1xf32>
    %183 = arith.subf %182, %177 : vector<8x1xf32>
    %cst_141 = arith.constant 1.000000e+00 : f32
    %184 = vector.broadcast %cst_141 : f32 to vector<8x1xf32>
    %185 = arith.addf %183, %184 : vector<8x1xf32>
    %cst_142 = arith.constant 0.000000e+00 : f32
    %186 = vector.broadcast %cst_142 : f32 to vector<8x1xf32>
    %187 = arith.maximumf %185, %186 : vector<8x1xf32>
    %c0_143 = arith.constant 0 : index
    %c0_144 = arith.constant 0 : index
    %188 = vector.load %arg13[%c0_143, %c0_144] : memref<8x1xf32, #tpu.memory_space<vmem>>, vector<8x1xf32>
    tpu.vector_store %arg13[%c0_143, %c0_144], %187 {strides = array<i32>} : memref<8x1xf32, #tpu.memory_space<vmem>>, vector<8x1xf32>,
    return
  }
  func.func @transform_0(%arg0: i32, %arg1: memref<16xi32, #tpu.memory_space<smem>>) -> (i32, i32) {
    %c0_i32 = arith.constant 0 : i32
    %c0_i32_0 = arith.constant 0 : i32
    %c0_i32_1 = arith.constant 0 : i32
    return %c0_i32, %c0_i32_0 : i32, i32
  }
  func.func @transform_1(%arg0: i32, %arg1: memref<16xi32, #tpu.memory_space<smem>>) -> (i32, i32) {
    %c0_i32 = arith.constant 0 : i32
    %c0_i32_0 = arith.constant 0 : i32
    %c0_i32_1 = arith.constant 0 : i32
    return %c0_i32, %c0_i32_0 : i32, i32
  }
  func.func @transform_2(%arg0: i32, %arg1: memref<16xi32, #tpu.memory_space<smem>>) -> (i32, i32) {
    %c0_i32 = arith.constant 0 : i32
    %c0_i32_0 = arith.constant 0 : i32
    %c0_i32_1 = arith.constant 0 : i32
    return %c0_i32, %c0_i32_0 : i32, i32
  }
  func.func @transform_4(%arg0: i32, %arg1: memref<16xi32, #tpu.memory_space<smem>>) -> (i32, i32, i32) {
    %c0_i32 = arith.constant 0 : i32
    %c0_i32_0 = arith.constant 0 : i32
    %c0_i32_1 = arith.constant 0 : i32
    %c0_i32_2 = arith.constant 0 : i32
    return %c0_i32, %c0_i32_0, %c0_i32_1 : i32, i32, i32
  }
  func.func @transform_5(%arg0: i32, %arg1: memref<16xi32, #tpu.memory_space<smem>>) -> (i32, i32, i32) {
    %c0_i32 = arith.constant 0 : i32
    %c0_i32_0 = arith.constant 0 : i32
    %c0_i32_1 = arith.constant 0 : i32
    %c0_i32_2 = arith.constant 0 : i32
    return %c0_i32, %c0_i32_0, %c0_i32_1 : i32, i32, i32
  }
  func.func @transform_6(%arg0: i32, %arg1: memref<16xi32, #tpu.memory_space<smem>>) -> (i32, i32, i32) {
    %c0_i32 = arith.constant 0 : i32
    %c0_i32_0 = arith.constant 0 : i32
    %c0_i32_1 = arith.constant 0 : i32
    %c0_i32_2 = arith.constant 0 : i32
    return %c0_i32, %c0_i32_0, %c0_i32_1 : i32, i32, i32
  }
  func.func @transform_7(%arg0: i32, %arg1: memref<16xi32, #tpu.memory_space<smem>>) -> (i32, i32, i32) {
    %c0_i32 = arith.constant 0 : i32
    %c0_i32_0 = arith.constant 0 : i32
    %c0_i32_1 = arith.constant 0 : i32
    %c0_i32_2 = arith.constant 0 : i32
    return %c0_i32, %c0_i32_0, %c0_i32_1 : i32, i32, i32
  }
  func.func @transform_8(%arg0: i32, %arg1: memref<16xi32, #tpu.memory_space<smem>>) -> (i32, i32, i32) {
    %c0_i32 = arith.constant 0 : i32
    %c0_i32_0 = arith.constant 0 : i32
    %c0_i32_1 = arith.constant 0 : i32
    %c0_i32_2 = arith.constant 0 : i32
    return %c0_i32, %c0_i32_0, %c0_i32_1 : i32, i32, i32
  }
  func.func @transform_9(%arg0: i32, %arg1: memref<16xi32, #tpu.memory_space<smem>>) -> (i32, i32) {
    %c0_i32 = arith.constant 0 : i32
    %c0_i32_0 = arith.constant 0 : i32
    %c0_i32_1 = arith.constant 0 : i32
    return %c0_i32, %c0_i32_0 : i32, i32
  }
  func.func @transform_10(%arg0: i32, %arg1: memref<16xi32, #tpu.memory_space<smem>>) -> (i32, i32) {
    %c0_i32 = arith.constant 0 : i32
    %c0_i32_0 = arith.constant 0 : i32
    %c0_i32_1 = arith.constant 0 : i32
    return %c0_i32, %c0_i32_0 : i32, i32
  }
  func.func @transform_11(%arg0: i32, %arg1: memref<16xi32, #tpu.memory_space<smem>>) -> (i32, i32) {
    %c0_i32 = arith.constant 0 : i32
    %c0_i32_0 = arith.constant 0 : i32
    %c0_i32_1 = arith.constant 0 : i32
    return %c0_i32, %c0_i32_0 : i32, i32
  }
}

</mosaic_0001>

<bundles_post_ra>
// kernel: pinsage_forward.1
= control target key start
LH: loop header
LB: loop body
LE: loop exit
PB: predicated region body
PF: predicated region fallthrough
CT: control target
= control target key end

     0   :  { %s2672_s0 = inlined_call_operand.vmem [shape: s32[16], index: 0, kind: input, shape index: {}]   ;;  %s2673_s1 = inlined_call_operand.vmem [shape: bf16[16,8], index: 1, kind: input, shape index: {}]   ;;  %s2674_s2 = inlined_call_operand.vmem [shape: bf16[8,128], index: 2, kind: input, shape index: {}]   ;;  %s2675_s3 = inlined_call_operand.vmem [shape: f32[1,128], index: 3, kind: input, shape index: {}]   ;;  %s2676_s4 = inlined_call_operand.vmem [shape: f32[32,128], index: 4, kind: input, shape index: {}]   ;;  %s2677_s5 = inlined_call_operand.vmem [shape: bf16[2,16,16], index: 5, kind: input, shape index: {}]   ;;  %s2678_s6 = inlined_call_operand.vmem [shape: bf16[2,128,128], index: 6, kind: input, shape index: {}]   ;;  %s2679_s7 = inlined_call_operand.vmem [shape: f32[2,1,128], index: 7, kind: input, shape index: {}]   ;;  %s2680_s8 = inlined_call_operand.vmem [shape: bf16[2,256,128], index: 8, kind: input, shape index: {}]   ;;  %s2681_s9 = inlined_call_operand.vmem [shape: f32[2,1,128], index: 9, kind: input, shape index: {}]   ;;  %s2682_s10 = inlined_call_operand.vmem [shape: s32[32,1], index: 10, kind: input, shape index: {}]   ;;  %s2683_s11 = inlined_call_operand.vmem [shape: f32[16,1], index: 11, kind: input, shape index: {}]   ;;  %s2684_s12 = inlined_call_operand.vmem [shape: f32[8,1], index: 12, kind: output, shape index: {}]  }
   0x1   :  { %s17_s23 = sshll.u32 %s2672_s0, 4  ;;  %s18_s23 = int_to_ptr.vmem [resolvable:$true] %s17_s23 }
   0x2   :  { %s2299_s24 = scalar_lea.vmem %s18_s23, 16  ;;  %p2304_p1 = scmp.lt.s32.totalorder %s18_s23, %s18_s23 }
   0x3   :  { %p2300_p0 = scmp.ne.s32.totalorder %s18_s23, %s2299_s24  ;;  %p2305_p2 = scmp.lt.s32.totalorder %s2299_s24, %s2299_s24 }
   0x5   :  { %p2306_p3 = por %p2305_p2, %p2304_p1 }
   0x7   :  { %p2307_p4 = pnand %p2306_p3, %p2300_p0 }
   0x9   :  { %2310 = shalt.err (!%p2307_p4)  }
   0xa   :  { %s2315_s25 = smov [#allocation5]  }
   0xb   :  { %20 = dma.vmem_to_smem %s18_s23, 16, %s2315_s25, [#allocation4] }
   0xc   :  { %2311 = dma.done.wait [#allocation4], 16 }
   0xd   :  { %2312 = vsyncadd [#allocation4], 4294967280 }
   0xe   :  { %22 = sfence }
   0xf   :  { %s44_s26 = sld [smem:[#allocation5]] }
  0x15   :  { %s45_s29 = scalar_lea.vmem %s2676_s4, %s44_s26 }
  0x16   :  { %v63_v0 = vld [vmem:[%s45_s29] sm:$0x1] }
  0x17   :  { %64 = vst [vmem:[#allocation2] sm:$0x1] %v63_v0 }
  0x18   :  { %89 = vsyncadd [#allocation3], 16  ;;  %s1958_s0 = sld [smem:[#allocation5 + $0x1]] }
  0x1e   :  { %s91_s14 = scalar_lea.vmem %s2676_s4, %s1958_s0 }
  0x1f   :  { %v110_v1 = vld [vmem:[%s91_s14] sm:$0x1] }
  0x20   :  { %111 = vst [vmem:[#allocation2 + $0x1] sm:$0x1] %v110_v1 }
  0x21   :  { %136 = vsyncadd [#allocation3], 16  ;;  %s1959_s15 = sld [smem:[#allocation5 + $0x2]] }
  0x27   :  { %s138_s18 = scalar_lea.vmem %s2676_s4, %s1959_s15 }
  0x28   :  { %v157_v2 = vld [vmem:[%s138_s18] sm:$0x1] }
  0x29   :  { %158 = vst [vmem:[#allocation2 + $0x2] sm:$0x1] %v157_v2 }
  0x2a   :  { %183 = vsyncadd [#allocation3], 16  ;;  %s1960_s19 = sld [smem:[#allocation5 + $0x3]] }
  0x30   :  { %s185_s22 = scalar_lea.vmem %s2676_s4, %s1960_s19 }
  0x31   :  { %v204_v3 = vld [vmem:[%s185_s22] sm:$0x1] }
  0x32   :  { %205 = vst [vmem:[#allocation2 + $0x3] sm:$0x1] %v204_v3 }
  0x33   :  { %230 = vsyncadd [#allocation3], 16  ;;  %s1961_s23 = sld [smem:[#allocation5 + $0x4]] }
  0x39   :  { %s232_s26 = scalar_lea.vmem %s2676_s4, %s1961_s23 }
  0x3a   :  { %v251_v4 = vld [vmem:[%s232_s26] sm:$0x1] }
  0x3b   :  { %252 = vst [vmem:[#allocation2 + $0x4] sm:$0x1] %v251_v4 }
  0x3c   :  { %277 = vsyncadd [#allocation3], 16  ;;  %s1962_s27 = sld [smem:[#allocation5 + $0x5]] }
  0x42   :  { %s279_s0 = scalar_lea.vmem %s2676_s4, %s1962_s27 }
  0x43   :  { %v298_v5 = vld [vmem:[%s279_s0] sm:$0x1] }
  0x44   :  { %299 = vst [vmem:[#allocation2 + $0x5] sm:$0x1] %v298_v5 }
  0x45   :  { %324 = vsyncadd [#allocation3], 16  ;;  %s1963_s30 = sld [smem:[#allocation5 + $0x6]] }
  0x4b   :  { %s326_s15 = scalar_lea.vmem %s2676_s4, %s1963_s30 }
  0x4c   :  { %v345_v6 = vld [vmem:[%s326_s15] sm:$0x1] }
  0x4d   :  { %346 = vst [vmem:[#allocation2 + $0x6] sm:$0x1] %v345_v6 }
  0x4e   :  { %371 = vsyncadd [#allocation3], 16  ;;  %s1964_s16 = sld [smem:[#allocation5 + $0x7]] }
  0x54   :  { %s373_s19 = scalar_lea.vmem %s2676_s4, %s1964_s16 }
  0x55   :  { %v392_v7 = vld [vmem:[%s373_s19] sm:$0x1] }
  0x56   :  { %393 = vst [vmem:[#allocation2 + $0x7] sm:$0x1] %v392_v7 }
  0x57   :  { %418 = vsyncadd [#allocation3], 16  ;;  %s1965_s20 = sld [smem:[#allocation5 + $0x8]] }
  0x5d   :  { %s420_s23 = scalar_lea.vmem %s2676_s4, %s1965_s20 }
  0x5e   :  { %v439_v8 = vld [vmem:[%s420_s23] sm:$0x1] }
  0x5f   :  { %440 = vst [vmem:[#allocation2 + $0x8] sm:$0x1] %v439_v8 }
  0x60   :  { %465 = vsyncadd [#allocation3], 16  ;;  %s1966_s24 = sld [smem:[#allocation5 + $0x9]] }
  0x66   :  { %s467_s27 = scalar_lea.vmem %s2676_s4, %s1966_s24 }
  0x67   :  { %v486_v9 = vld [vmem:[%s467_s27] sm:$0x1] }
  0x68   :  { %487 = vst [vmem:[#allocation2 + $0x9] sm:$0x1] %v486_v9 }
  0x69   :  { %512 = vsyncadd [#allocation3], 16  ;;  %s1967_s28 = sld [smem:[#allocation5 + $0xa]] }
  0x6f   :  { %s514_s30 = scalar_lea.vmem %s2676_s4, %s1967_s28 }
  0x70   :  { %v533_v10 = vld [vmem:[%s514_s30] sm:$0x1] }
  0x71   :  { %534 = vst [vmem:[#allocation2 + $0xa] sm:$0x1] %v533_v10 }
  0x72   :  { %559 = vsyncadd [#allocation3], 16  ;;  %s1968_s13 = sld [smem:[#allocation5 + $0xb]] }
  0x78   :  { %s561_s16 = scalar_lea.vmem %s2676_s4, %s1968_s13 }
  0x79   :  { %v580_v11 = vld [vmem:[%s561_s16] sm:$0x1] }
  0x7a   :  { %581 = vst [vmem:[#allocation2 + $0xb] sm:$0x1] %v580_v11 }
  0x7b   :  { %606 = vsyncadd [#allocation3], 16  ;;  %s1969_s17 = sld [smem:[#allocation5 + $0xc]] }
  0x81   :  { %s608_s20 = scalar_lea.vmem %s2676_s4, %s1969_s17 }
  0x82   :  { %v627_v12 = vld [vmem:[%s608_s20] sm:$0x1] }
  0x83   :  { %628 = vst [vmem:[#allocation2 + $0xc] sm:$0x1] %v627_v12 }
  0x84   :  { %653 = vsyncadd [#allocation3], 16  ;;  %s1970_s21 = sld [smem:[#allocation5 + $0xd]] }
  0x8a   :  { %s655_s24 = scalar_lea.vmem %s2676_s4, %s1970_s21 }
  0x8b   :  { %v674_v13 = vld [vmem:[%s655_s24] sm:$0x1] }
  0x8c   :  { %675 = vst [vmem:[#allocation2 + $0xd] sm:$0x1] %v674_v13 }
  0x8d   :  { %700 = vsyncadd [#allocation3], 16  ;;  %s1971_s25 = sld [smem:[#allocation5 + $0xe]] }
  0x93   :  { %s702_s28 = scalar_lea.vmem %s2676_s4, %s1971_s25 }
  0x94   :  { %v721_v14 = vld [vmem:[%s702_s28] sm:$0x1] }
  0x95   :  { %722 = vst [vmem:[#allocation2 + $0xe] sm:$0x1] %v721_v14 }
  0x96   :  { %747 = vsyncadd [#allocation3], 16  ;;  %s1972_s29 = sld [smem:[#allocation5 + $0xf]] }
  0x9c   :  { %s749_s13 = scalar_lea.vmem %s2676_s4, %s1972_s29 }
  0x9d   :  { %v768_v15 = vld [vmem:[%s749_s13] sm:$0x1] }
  0x9e   :  { %769 = vst [vmem:[#allocation2 + $0xf] sm:$0x1] %v768_v15 }
  0x9f   :  { %794 = vsyncadd [#allocation3], 16  ;;  %v797_v16 = vld [vmem:[%s2674_s2] sm:$0xf]  ;;  %vm807_vm0 = vcmask 1043456   ;;  %v2316_v17 = vmov 0.0  }
  0xa0   :  { %2162 = vmatprep.subr.bf16.mxu1 %v2316_v17  ;;  %v809_v18 = vsel %vm807_vm0, %v797_v16, 0  ;;  %vm2317_vm1 = vmmov 0   ;;  %v2230_v19 = vld [vmem:[%s2673_s1] sm:$0xff]   ;;  %vm803_vm2 = vcmask 64512  }
  0xa1   :  { %2163 = vmatpush3.bf16.msra.mxu1 %v809_v18  ;;  %2164 = vmatprep.mubr.msk.bf16.mxu1 %vm2317_vm1, %v2316_v17 }
  0xa4   :  { %2165 = vmatmul.mubr.msk.bf16.vlgmr.msra.gmra.mrb[0].mxu1 %vm803_vm2, %v2230_v19 }
 0x177   :  { %v845_v20 = vpop.f32.mrb[0].mxu1 }
 0x178   :  { %v2166_v21 = vpop.f32.mrb[1].mxu1 }
 0x179   :  { %v848_v22 = vpop.f32.mrb[2].mxu1 }
 0x17a   :  { %v2167_v23 = vpop.f32.mrb[3].mxu1 }
 0x17b   :  { %2313 = dma.done.wait [#allocation3], 256 }
 0x17c   :  { %2314 = vsyncadd [#allocation3], 4294967040  ;;  %2168 = vmatprep.subr.bf16.mxu1 %v2316_v17  ;;  %2184 = vmatprep.mubr.msk.bf16.mxu1 %vm2317_vm1, %v2316_v17  ;;  %v2233_v24 = vld [vmem:[%s2678_s6] sm:$0xff]   ;;  %v2234_v25 = vld [vmem:[%s2678_s6 + $0x8] sm:$0xff]   ;;  %vm1021_vm3 = vcmask 130048  }
 0x17d   :  { %2188 = vmatprep.subr.bf16.mxu0 %v2316_v17  ;;  %2190 = vmatprep.mubr.msk.bf16.mxu0 %vm2317_vm1, %v2316_v17  ;;  %v2235_v26 = vld [vmem:[%s2678_s6 + $0x10] sm:$0xff]   ;;  %v2236_v27 = vld [vmem:[%s2678_s6 + $0x18] sm:$0xff]   ;;  %v2237_v28 = vld [vmem:[%s2678_s6 + $0x20] sm:$0xff]  }
 0x17e   :  { %2169 = vmatpush3.bf16.msra.mxu1 %v2233_v24  ;;  %v2238_v29 = vld [vmem:[%s2678_s6 + $0x28] sm:$0xff]   ;;  %v885_v30 = vld [vmem:[#allocation2] sm:$0xff]  ;;  %v2239_v32 = vld [vmem:[%s2678_s6 + $0x30] sm:$0xff]  }
 0x17f   :  { %2170 = vmatprep.subr.bf16.mxu1 %v2316_v17  ;;  %v886_v31 = vld [vmem:[#allocation2 + $0x8] sm:$0xff]  ;;  %v1975_v33 = vld [vmem:[%s2675_s3] ss:$0 sm:$0xff]  ;;  %v887_v34 = vadd.f32 %v885_v30, %v845_v20  ;;  %v2240_v36 = vld [vmem:[%s2678_s6 + $0x38] sm:$0xff]  }
 0x180   :  { %v888_v35 = vadd.f32 %v886_v31, %v848_v22  ;;  %v1976_v40 = vld [vmem:[%s2679_s7] ss:$0 sm:$0xff]  ;;  %v2244_v53 = vld [vmem:[%s2680_s8 + $0x48] sm:$0xff]   ;;  %v2246_v55 = vld [vmem:[%s2680_s8 + $0x50] sm:$0xff]  }
 0x181   :  { %v2483_v37 = vadd.f32 %v1975_v33, %v887_v34  ;;  %v2242_v49 = vld [vmem:[%s2680_s8 + $0x40] sm:$0xff]   ;;  %v2245_v54 = vld [vmem:[%s2680_s8 + $0x8] sm:$0xff]   ;;  %v2247_v56 = vld [vmem:[%s2680_s8 + $0x10] sm:$0xff]  }
 0x182   :  { %2171 = vmatpush3.bf16.msra.mxu1 %v2234_v25  ;;  %v2485_v38 = vadd.f32 %v1975_v33, %v888_v35  ;;  %v2241_v51 = vld [vmem:[%s2677_s5] sm:$0xff]   ;;  %v2248_v57 = vld [vmem:[%s2680_s8 + $0x58] sm:$0xff]   ;;  %v2252_v61 = vld [vmem:[%s2680_s8 + $0x68] sm:$0xff]  }
 0x183   :  { %2172 = vmatprep.subr.bf16.mxu1 %v2316_v17  ;;  %v2243_v52 = vld [vmem:[%s2680_s8] sm:$0xff]   ;;  %v2249_v58 = vld [vmem:[%s2680_s8 + $0x18] sm:$0xff]   ;;  %v2253_v62 = vld [vmem:[%s2680_s8 + $0x28] sm:$0xff]  }
 0x184   :  { %v898_v39 = vpack.c.bf16 %v2485_v38, %v2483_v37  ;;  %v2250_v59 = vld [vmem:[%s2680_s8 + $0x60] sm:$0xff]   ;;  %v2254_v63 = vld [vmem:[%s2680_s8 + $0x70] sm:$0xff]   ;;  %v2256_v1 = vld [vmem:[%s2680_s8 + $0x78] sm:$0xff]  }
 0x185   :  { %v2251_v60 = vld [vmem:[%s2680_s8 + $0x20] sm:$0xff]   ;;  %v2255_v0 = vld [vmem:[%s2680_s8 + $0x30] sm:$0xff]   ;;  %v2257_v2 = vld [vmem:[%s2680_s8 + $0x38] sm:$0xff]  }
 0x186   :  { %2173 = vmatpush3.bf16.msra.mxu1 %v2235_v26  ;;  %v1987_v10 = vld [vmem:[%s2681_s9] ss:$0 sm:$0xff]  ;;  %v2259_v23 = vld [vmem:[%s2678_s6 + $0x48] sm:$0xff]   ;;  %v2260_v24 = vld [vmem:[%s2678_s6 + $0x50] sm:$0xff]  }
 0x187   :  { %2174 = vmatprep.subr.bf16.mxu1 %v2316_v17  ;;  %v2258_v22 = vld [vmem:[%s2678_s6 + $0x40] sm:$0xff]   ;;  %v2261_v25 = vld [vmem:[%s2678_s6 + $0x58] sm:$0xff]  }
 0x188   :  { %v2262_v26 = vld [vmem:[%s2678_s6 + $0x60] sm:$0xff]  }
 0x18a   :  { %2175 = vmatpush3.bf16.msra.mxu1 %v2236_v27  ;;  %v2263_v27 = vld [vmem:[%s2678_s6 + $0x68] sm:$0xff]  }
 0x18b   :  { %2176 = vmatprep.subr.bf16.mxu1 %v2316_v17 }
 0x18e   :  { %2177 = vmatpush3.bf16.msra.mxu1 %v2237_v28  ;;  %v2264_v28 = vld [vmem:[%s2678_s6 + $0x70] sm:$0xff]  }
 0x18f   :  { %2178 = vmatprep.subr.bf16.mxu1 %v2316_v17 }
 0x192   :  { %2179 = vmatpush3.bf16.msra.mxu1 %v2238_v29  ;;  %v2265_v29 = vld [vmem:[%s2678_s6 + $0x78] sm:$0xff]  }
 0x193   :  { %2180 = vmatprep.subr.bf16.mxu1 %v2316_v17 }
 0x196   :  { %2181 = vmatpush3.bf16.msra.mxu1 %v2239_v32 }
 0x197   :  { %2182 = vmatprep.subr.bf16.mxu1 %v2316_v17 }
 0x19a   :  { %2183 = vmatpush3.bf16.msra.mxu1 %v2240_v36 }
 0x19b   :  { %2194 = vmatprep.subr.bf16.mxu1 %v2316_v17 }
 0x19d   :  { %2185 = vmatmul.mubr.bf16.vlgmr.msra.gmra.mrb[4].mxu1 %v898_v39 }
 0x19e   :  { %2210 = vmatprep.mubr.msk.bf16.mxu1 %vm2317_vm1, %v2316_v17  ;;  %2195 = vmatpush3.bf16.msra.mxu1 %v2258_v22 }
 0x19f   :  { %2196 = vmatprep.subr.bf16.mxu1 %v2316_v17 }
 0x1a2   :  { %2197 = vmatpush3.bf16.msra.mxu1 %v2259_v23 }
 0x1a3   :  { %2198 = vmatprep.subr.bf16.mxu1 %v2316_v17 }
 0x1a6   :  { %2199 = vmatpush3.bf16.msra.mxu1 %v2260_v24  ;;  %v2067_v24 = vld [vmem:[%s2681_s9 + $0x1] ss:$0 sm:$0xff] }
 0x1a7   :  { %2200 = vmatprep.subr.bf16.mxu1 %v2316_v17 }
 0x1aa   :  { %2201 = vmatpush3.bf16.msra.mxu1 %v2261_v25 }
 0x1ab   :  { %2202 = vmatprep.subr.bf16.mxu1 %v2316_v17 }
 0x1ae   :  { %2203 = vmatpush3.bf16.msra.mxu1 %v2262_v26 }
 0x1af   :  { %2204 = vmatprep.subr.bf16.mxu1 %v2316_v17 }
 0x1b2   :  { %2205 = vmatpush3.bf16.msra.mxu1 %v2263_v27 }
 0x1b3   :  { %2206 = vmatprep.subr.bf16.mxu1 %v2316_v17 }
 0x1b6   :  { %2207 = vmatpush3.bf16.msra.mxu1 %v2264_v28 }
 0x1b7   :  { %2208 = vmatprep.subr.bf16.mxu1 %v2316_v17 }
 0x1ba   :  { %2209 = vmatpush3.bf16.msra.mxu1 %v2265_v29 }
 0x270   :  { %v1004_v41 = vpop.f32.mrb[4].mxu1 }
 0x271   :  { %v1005_v42 = vadd.f32 %v1976_v40, %v1004_v41  ;;  %v2186_v43 = vpop.f32.mrb[5].mxu1 }
 0x272   :  { %v1007_v44 = vpop.f32.mrb[6].mxu1 }
 0x273   :  { %v1008_v45 = vadd.f32 %v1976_v40, %v1007_v44  ;;  %v2187_v46 = vpop.f32.mrb[7].mxu1  ;;  %v1011_v47 = vmax.f32 %v1005_v42, 0.0 }
 0x275   :  { %v1012_v48 = vmax.f32 %v1008_v45, 0.0 }
 0x277   :  { %v1015_v50 = vpack.c.bf16 %v1012_v48, %v1011_v47 }
 0x279   :  { %2189 = vmatpush3.bf16.msra.mxu0 %v1015_v50 }
 0x27a   :  { %2104 = vmatprep.subr.bf16.mxu0 %v2242_v49 }
 0x27c   :  { %2191 = vmatmul.mubr.msk.bf16.vlgmr.msra.gmra.mrb[0].mxu0 %vm1021_vm3, %v2241_v51  ;;  %v2021_v51 = vld [vmem:[%s2679_s7 + $0x1] ss:$0 sm:$0xff] }
 0x27d   :  { %2105 = vmatpush3.bf16.msra.mxu0 %v2243_v52  ;;  %1234 = vmatprep.mubr.bf16.mxu0 %v898_v39 }
 0x27e   :  { %2106 = vmatprep.subr.bf16.mxu0 %v2244_v53 }
 0x281   :  { %2107 = vmatpush3.bf16.msra.mxu0 %v2245_v54 }
 0x282   :  { %2108 = vmatprep.subr.bf16.mxu0 %v2246_v55 }
 0x285   :  { %2109 = vmatpush3.bf16.msra.mxu0 %v2247_v56 }
 0x286   :  { %2110 = vmatprep.subr.bf16.mxu0 %v2248_v57 }
 0x289   :  { %2111 = vmatpush3.bf16.msra.mxu0 %v2249_v58 }
 0x28a   :  { %2112 = vmatprep.subr.bf16.mxu0 %v2250_v59 }
 0x28d   :  { %2113 = vmatpush3.bf16.msra.mxu0 %v2251_v60  ;;  %v2267_v60 = vld [vmem:[%s2680_s8 + $0xc0] sm:$0xff]  }
 0x28e   :  { %2114 = vmatprep.subr.bf16.mxu0 %v2252_v61 }
 0x291   :  { %2115 = vmatpush3.bf16.msra.mxu0 %v2253_v62  ;;  %v2266_v62 = vld [vmem:[%s2677_s5 + $0x8] sm:$0xff]  }
 0x292   :  { %2116 = vmatprep.subr.bf16.mxu0 %v2254_v63  ;;  %v2268_v63 = vld [vmem:[%s2680_s8 + $0x80] sm:$0xff]  }
 0x295   :  { %2117 = vmatpush3.bf16.msra.mxu0 %v2255_v0  ;;  %v2269_v0 = vld [vmem:[%s2680_s8 + $0xc8] sm:$0xff]  }
 0x296   :  { %2118 = vmatprep.subr.bf16.mxu0 %v2256_v1  ;;  %v2270_v1 = vld [vmem:[%s2680_s8 + $0x88] sm:$0xff]  }
 0x299   :  { %2119 = vmatpush3.bf16.msra.mxu0 %v2257_v2  ;;  %v2271_v2 = vld [vmem:[%s2680_s8 + $0xd0] sm:$0xff]  }
 0x29a   :  { %2214 = vmatprep.subr.bf16.mxu0 %v2316_v17 }
 0x34f   :  { %v1059_v3 = vpop.f32.mrb[0].mxu0 }
 0x350   :  { %v2192_v4 = vpop.f32.mrb[1].mxu0 }
 0x351   :  { %v1062_v5 = vpop.f32.mrb[2].mxu0  ;;  %v2273_v4 = vld [vmem:[%s2680_s8 + $0xd8] sm:$0xff]  }
 0x352   :  { %v1066_v6 = vpack.c.bf16 %v1062_v5, %v1059_v3  ;;  %v2193_v7 = vpop.f32.mrb[3].mxu0  ;;  %v2272_v3 = vld [vmem:[%s2680_s8 + $0x90] sm:$0xff]   ;;  %v2274_v5 = vld [vmem:[%s2680_s8 + $0x98] sm:$0xff]  }
 0x353   :  { %v2276_v7 = vld [vmem:[%s2680_s8 + $0xa0] sm:$0xff]  }
 0x354   :  { %1235 = vmatmul.mubr.bf16.vlgmr.msra.gmra.mrb[4].mxu0 %v1066_v6  ;;  %v2275_v6 = vld [vmem:[%s2680_s8 + $0xe0] sm:$0xff]  }
 0x355   :  { %2216 = vmatprep.mubr.msk.bf16.mxu0 %vm2317_vm1, %v2316_v17 }
 0x427   :  { %v2120_v8 = vpop.f32.mrb[4].mxu0 }
 0x428   :  { %v2121_v9 = vpop.f32.mrb[5].mxu0 }
 0x429   :  { %v2122_v11 = vadd.f32 %v2121_v9, %v2120_v8  ;;  %v2123_v12 = vpop.f32.mrb[6].mxu0  ;;  %v2277_v8 = vld [vmem:[%s2680_s8 + $0xe8] sm:$0xff]  }
 0x42a   :  { %v2124_v13 = vpop.f32.mrb[7].mxu0  ;;  %v2278_v9 = vld [vmem:[%s2680_s8 + $0xa8] sm:$0xff]  }
 0x42b   :  { %v2125_v14 = vadd.f32 %v2124_v13, %v2123_v12  ;;  %v1237_v15 = vadd.f32 %v2122_v11, %v1987_v10  ;;  %v2280_v11 = vld [vmem:[%s2680_s8 + $0xb0] sm:$0xff]   ;;  %v2281_v12 = vld [vmem:[%s2680_s8 + $0xf8] sm:$0xff]  }
 0x42c   :  { %v2282_v13 = vld [vmem:[%s2680_s8 + $0xb8] sm:$0xff]  }
 0x42d   :  { %v1240_v16 = vadd.f32 %v2125_v14, %v1987_v10  ;;  %v1243_v18 = vmax.f32 %v1237_v15, 0.0  ;;  %v2279_v10 = vld [vmem:[%s2680_s8 + $0xf0] sm:$0xff]  }
 0x42f   :  { %v1244_v19 = vmax.f32 %v1240_v16, 0.0  ;;  %v1245_v20 = vmul.f32 %v1243_v18, %v1243_v18 }
 0x431   :  { %1247 = vadd.xlane.f32.xlu0 %v1245_v20  ;;  %v1246_v21 = vmul.f32 %v1244_v19, %v1244_v19  ;;  %v2318_v20 = vmov 0  }
 0x432   :  { %2232 = vset.pattern.permute.xlu1 %v2318_v20  ;;  %2231 = vset.pattern.permute.xlu0 %v2318_v20 }
 0x435   :  { %1249 = vadd.xlane.f32.xlu0 %v1246_v21  ;;  %v1657_v21 = vld [vmem:[%s2682_s10] sm:$0xff] }
 0x44b   :  { %1662 = vperm.xlu0 %2231, %v1657_v21  }
 0x4be   :  { %v1248_v30 = vpop.xlane.xlu0 %1247 }
 0x4bf   :  { %2283 = vrsqrt.f32 %v1248_v30  ;;  %vm1253_vm4 = vcmp.eq.f32.partialorder %v1248_v30, inf  ;;  %v1256_v34 = vand.u32 2147483648, %v1248_v30  ;;  %vm1255_vm5 = vcmp.eq.f32.partialorder %v1248_v30, 0.0 }
 0x4c2   :  { %v1250_v31 = vpop.xlane.xlu0 %1249 }
 0x4c3   :  { %2285 = vrsqrt.f32 %v1250_v31  ;;  %vm1260_vm7 = vcmp.eq.f32.partialorder %v1250_v31, inf  ;;  %v1263_v42 = vand.u32 2147483648, %v1250_v31  ;;  %vm1262_vm8 = vcmp.eq.f32.partialorder %v1250_v31, 0.0 }
 0x4c9   :  { %v2284_v32 = vpop.eup %2283 }
 0x4ca   :  { %v1252_v33 = vmul.f32 %v2284_v32, %v1248_v30 }
 0x4cc   :  { %v1254_v35 = vsel %vm1253_vm4, %v1248_v30, %v1252_v33 }
 0x4cd   :  { %v2286_v36 = vpop.eup %2285  ;;  %v1257_v39 = vsel %vm1255_vm5, %v1256_v34, %v1254_v35  ;;  %v1658_v35 = vld [vmem:[%s2682_s10 + $0x8] sm:$0xff] }
 0x4ce   :  { %vm1265_vm6 = vcmp.eq.f32.partialorder %v1257_v39, 0.0  ;;  %v1259_v40 = vmul.f32 %v2286_v36, %v1250_v31  ;;  %v1659_v36 = vld [vmem:[%s2682_s10 + $0x10] sm:$0xff] }
 0x4cf   :  { %v1267_v41 = vsel %vm1265_vm6, 1.0, %v1257_v39  ;;  %v1660_v39 = vld [vmem:[%s2682_s10 + $0x18] sm:$0xff] }
 0x4d0   :  { %v1261_v43 = vsel %vm1260_vm7, %v1250_v31, %v1259_v40  ;;  %2287 = vrcp.f32 %v1267_v41  ;;  %v1655_v40 = vlaneseq }
 0x4d1   :  { %v1264_v44 = vsel %vm1262_vm8, %v1263_v42, %v1261_v43  ;;  %v1663_v43 = vpop.permute.xlu0 %1662 }
 0x4d2   :  { %vm1266_vm9 = vcmp.eq.f32.partialorder %v1264_v44, 0.0  ;;  %v1656_v42 = vand.u32 127, %v1655_v40 }
 0x4d3   :  { %v1268_v45 = vsel %vm1266_vm9, 1.0, %v1264_v44 }
 0x4d4   :  { %2289 = vrcp.f32 %v1268_v45  ;;  %vm1673_vm10 = vcmp.eq.s32.totalorder %v1656_v42, %v1663_v43 }
 0x4da   :  { %v2288_v46 = vpop.eup %2287 }
 0x4db   :  { %v1270_v48 = vmul.f32 %v2288_v46, %v1243_v18  ;;  %v2084_v46 = vsel %vm1673_vm10, 1.0, %v2316_v17 }
 0x4de   :  { %v2290_v47 = vpop.eup %2289 }
 0x4df   :  { %v1272_v49 = vmul.f32 %v2290_v47, %v1244_v19 }
 0x4e1   :  { %v1273_v50 = vpack.c.bf16 %v1272_v49, %v1270_v48 }
 0x4e3   :  { %2211 = vmatmul.mubr.bf16.vlgmr.msra.gmra.mrb[8].mxu1 %v1273_v50 }
 0x5b6   :  { %v1381_v52 = vpop.f32.mrb[8].mxu1 }
 0x5b7   :  { %v1382_v53 = vadd.f32 %v2021_v51, %v1381_v52  ;;  %v2212_v54 = vpop.f32.mrb[9].mxu1 }
 0x5b8   :  { %v1384_v55 = vpop.f32.mrb[10].mxu1 }
 0x5b9   :  { %v1385_v56 = vadd.f32 %v2021_v51, %v1384_v55  ;;  %v2213_v57 = vpop.f32.mrb[11].mxu1  ;;  %v1388_v58 = vmax.f32 %v1382_v53, 0.0 }
 0x5bb   :  { %v1389_v59 = vmax.f32 %v1385_v56, 0.0 }
 0x5bd   :  { %v1393_v61 = vpack.c.bf16 %v1389_v59, %v1388_v58 }
 0x5bf   :  { %2215 = vmatpush3.bf16.msra.mxu0 %v1393_v61 }
 0x5c0   :  { %2137 = vmatprep.subr.bf16.mxu0 %v2267_v60 }
 0x5c2   :  { %2217 = vmatmul.mubr.msk.bf16.vlgmr.msra.gmra.mrb[8].mxu0 %vm1021_vm3, %v2266_v62 }
 0x5c3   :  { %1613 = vmatprep.mubr.bf16.mxu0 %v1273_v50  ;;  %2138 = vmatpush3.bf16.msra.mxu0 %v2268_v63 }
 0x5c4   :  { %2139 = vmatprep.subr.bf16.mxu0 %v2269_v0 }
 0x5c7   :  { %2140 = vmatpush3.bf16.msra.mxu0 %v2270_v1 }
 0x5c8   :  { %2141 = vmatprep.subr.bf16.mxu0 %v2271_v2 }
 0x5cb   :  { %2142 = vmatpush3.bf16.msra.mxu0 %v2272_v3 }
 0x5cc   :  { %2143 = vmatprep.subr.bf16.mxu0 %v2273_v4 }
 0x5cf   :  { %2144 = vmatpush3.bf16.msra.mxu0 %v2274_v5 }
 0x5d0   :  { %2145 = vmatprep.subr.bf16.mxu0 %v2275_v6 }
 0x5d3   :  { %2146 = vmatpush3.bf16.msra.mxu0 %v2276_v7 }
 0x5d4   :  { %2147 = vmatprep.subr.bf16.mxu0 %v2277_v8 }
 0x5d7   :  { %2148 = vmatpush3.bf16.msra.mxu0 %v2278_v9 }
 0x5d8   :  { %2149 = vmatprep.subr.bf16.mxu0 %v2279_v10 }
 0x5db   :  { %2150 = vmatpush3.bf16.msra.mxu0 %v2280_v11 }
 0x5dc   :  { %2151 = vmatprep.subr.bf16.mxu0 %v2281_v12 }
 0x5df   :  { %2152 = vmatpush3.bf16.msra.mxu0 %v2282_v13 }
 0x695   :  { %v1436_v14 = vpop.f32.mrb[8].mxu0 }
 0x696   :  { %v2218_v15 = vpop.f32.mrb[9].mxu0 }
 0x697   :  { %v1439_v16 = vpop.f32.mrb[10].mxu0 }
 0x698   :  { %v1443_v18 = vpack.c.bf16 %v1439_v16, %v1436_v14  ;;  %v2219_v19 = vpop.f32.mrb[11].mxu0 }
 0x69a   :  { %1614 = vmatmul.mubr.bf16.vlgmr.msra.gmra.mrb[12].mxu0 %v1443_v18 }
 0x76d   :  { %v2153_v22 = vpop.f32.mrb[12].mxu0 }
 0x76e   :  { %v2154_v23 = vpop.f32.mrb[13].mxu0 }
 0x76f   :  { %v2155_v25 = vadd.f32 %v2154_v23, %v2153_v22  ;;  %v2156_v26 = vpop.f32.mrb[14].mxu0 }
 0x770   :  { %v2157_v27 = vpop.f32.mrb[15].mxu0 }
 0x771   :  { %v2158_v28 = vadd.f32 %v2157_v27, %v2156_v26  ;;  %v1616_v29 = vadd.f32 %v2155_v25, %v2067_v24 }
 0x773   :  { %v1619_v30 = vadd.f32 %v2158_v28, %v2067_v24  ;;  %v1622_v31 = vmax.f32 %v1616_v29, 0.0 }
 0x775   :  { %v1623_v32 = vmax.f32 %v1619_v30, 0.0  ;;  %v1624_v33 = vmul.f32 %v1622_v31, %v1622_v31 }
 0x777   :  { %1626 = vadd.xlane.f32.xlu1 %v1624_v33  ;;  %v1625_v34 = vmul.f32 %v1623_v32, %v1623_v32 }
 0x77b   :  { %1628 = vadd.xlane.f32.xlu1 %v1625_v34 }
 0x78c   :  { %1665 = vperm.xlu1 %2232, %v1658_v35  }
 0x790   :  { %1668 = vperm.xlu1 %2232, %v1659_v36  }
 0x794   :  { %1671 = vperm.xlu1 %2232, %v1660_v39  }
 0x804   :  { %v1627_v41 = vpop.xlane.xlu1 %1626 }
 0x805   :  { %2291 = vrsqrt.f32 %v1627_v41  ;;  %vm1632_vm12 = vcmp.eq.f32.partialorder %v1627_v41, inf  ;;  %v1635_v51 = vand.u32 2147483648, %v1627_v41  ;;  %vm1634_vm13 = vcmp.eq.f32.partialorder %v1627_v41, 0.0 }
 0x808   :  { %v1629_v44 = vpop.xlane.xlu1 %1628 }
 0x809   :  { %2293 = vrsqrt.f32 %v1629_v44  ;;  %vm1639_vm15 = vcmp.eq.f32.partialorder %v1629_v44, inf  ;;  %v1642_v57 = vand.u32 2147483648, %v1629_v44  ;;  %vm1641_vm0 = vcmp.eq.f32.partialorder %v1629_v44, 0.0 }
 0x80c   :  { %v1666_v45 = vpop.permute.xlu1 %1665 }
 0x80d   :  { %vm1674_vm11 = vcmp.eq.s32.totalorder %v1656_v42, %v1666_v45 }
 0x80e   :  { %v2085_v47 = vsel %vm1674_vm11, 1.0, %v2316_v17 }
 0x80f   :  { %v2292_v48 = vpop.eup %2291  ;;  %v1685_v49 = vpack.c.bf16 %v2085_v47, %v2084_v46 }
 0x810   :  { %v1631_v50 = vmul.f32 %v2292_v48, %v1627_v41  ;;  %v1669_v61 = vpop.permute.xlu1 %1668 }
 0x811   :  { %2222 = vmatprep.mubr.msk.bf16.mxu1 %vm1021_vm3, %v1685_v49  ;;  %vm1675_vm2 = vcmp.eq.s32.totalorder %v1656_v42, %v1669_v61 }
 0x812   :  { %v1633_v52 = vsel %vm1632_vm12, %v1627_v41, %v1631_v50  ;;  %v2086_v6 = vsel %vm1675_vm2, 1.0, %v2316_v17 }
 0x813   :  { %v2294_v53 = vpop.eup %2293  ;;  %v1636_v54 = vsel %vm1634_vm13, %v1635_v51, %v1633_v52 }
 0x814   :  { %vm1644_vm14 = vcmp.eq.f32.partialorder %v1636_v54, 0.0  ;;  %v1638_v55 = vmul.f32 %v2294_v53, %v1629_v44  ;;  %v1672_v1 = vpop.permute.xlu1 %1671 }
 0x815   :  { %v1646_v56 = vsel %vm1644_vm14, 1.0, %v1636_v54  ;;  %vm1676_vm4 = vcmp.eq.s32.totalorder %v1656_v42, %v1672_v1 }
 0x816   :  { %2295 = vrcp.f32 %v1646_v56  ;;  %v1640_v58 = vsel %vm1639_vm15, %v1629_v44, %v1638_v55  ;;  %v2087_v7 = vsel %vm1676_vm4, 1.0, %v2316_v17  ;;  %v1742_v17 = vld [vmem:[%s2683_s11] sm:$0xff] }
 0x817   :  { %v1643_v59 = vsel %vm1641_vm0, %v1642_v57, %v1640_v58  ;;  %v1686_v8 = vpack.c.bf16 %v2087_v7, %v2086_v6 }
 0x818   :  { %vm1645_vm1 = vcmp.eq.f32.partialorder %v1643_v59, 0.0 }
 0x819   :  { %v1647_v60 = vsel %vm1645_vm1, 1.0, %v1643_v59 }
 0x81a   :  { %2297 = vrcp.f32 %v1647_v60 }
 0x820   :  { %v2296_v62 = vpop.eup %2295 }
 0x821   :  { %v1649_v63 = vmul.f32 %v2296_v62, %v1622_v31 }
 0x823   :  { %v1652_v3 = vadd.f32 %v1649_v63, %v2483_v37  ;;  %v1743_v37 = vld [vmem:[%s2683_s11 + $0x8] sm:$0xff] }
 0x824   :  { %v2298_v0 = vpop.eup %2297 }
 0x825   :  { %v1651_v2 = vmul.f32 %v2298_v0, %v1623_v32 }
 0x827   :  { %v1653_v4 = vadd.f32 %v1651_v2, %v2485_v38 }
 0x829   :  { %v1654_v5 = vpack.c.bf16 %v1653_v4, %v1652_v3 }
 0x82b   :  { %2220 = vmatprep.subr.bf16.mxu1 %v1654_v5 }
 0x82c   :  { %2221 = vmatpush3.bf16.msra.mxu1 %v1654_v5 }
 0x82f   :  { %2223 = vmatmul.mubr.msk.bf16.vlgmr.msra.gmra.mrb[12].mxu1 %vm1021_vm3, %v1686_v8  ;;  %vm1755_vm3 = vcmask 7168  }
 0x902   :  { %v2224_v9 = vpop.f32.mrb[12].mxu1 }
 0x903   :  { %v1727_v10 = vpop.f32.mrb[13].mxu1 }
 0x904   :  { %v2225_v11 = vpop.f32.mrb[14].mxu1 }
 0x905   :  { %v1748_v12 = vmul.f32 %v2225_v11, %v2224_v9  ;;  %v1730_v13 = vpop.f32.mrb[15].mxu1 }
 0x906   :  { %v1744_v14 = vmul.f32 %v1730_v13, %v1727_v10 }
 0x907   :  { %1749 = vadd.xlane.f32.xlu0 %v1748_v12 }
 0x908   :  { %1745 = vadd.xlane.f32.xlu1 %v1744_v14 }
 0x994   :  { %v1750_v38 = vpop.xlane.xlu0 %1749 }
 0x995   :  { %v1751_v15 = vadd.f32 %v1750_v38, %v1743_v37  ;;  %v1746_v16 = vpop.xlane.xlu1 %1745 }
 0x996   :  { %v1747_v18 = vadd.f32 %v1746_v16, %v1742_v17 }
 0x998   :  { %v1752_v19 = vsub.f32 %v1751_v15, %v1747_v18 }
 0x99a   :  { %v1753_v20 = vadd.f32 1.0, %v1752_v19 }
 0x99c   :  { %v1754_v21 = vmax.f32 %v1753_v20, 0.0 }
 0x99e   :  { %1756 = vst.msk [vmem:[%s2684_s12] sm:$0xff] %vm1755_vm3, %v1754_v21 }
 0x99f   :  { %1761 = vsyncmov [#allocation3] }
 0x9a2   :  { %s1762_s2 = vpop.sfrf %1761 }
 0x9a3   :  { %p2090_p5 = scmp.ne.s32.totalorder %s1762_s2, 0 }
 0x9a5   :  { %1766 = shalt.err (%p2090_p5)  }

</bundles_post_ra>
